<compile_context>
chip_gen: v7x
topology: tpu7x:2x2x1
jax: 0.10.0
libtpu: 0.0.40
codegen_flags: <defaults>
</compile_context>

<pallas_src>
import jax
import jax.numpy as jnp
from jax.experimental import pallas as pl
from jax.experimental.pallas import tpu as pltpu

# ------------------------- configuration ("args") ---------------------------
RNN_HIDDEN_DIM = 32          # args.rnn_hidden_dim
N_ACTIONS = 6                # args.n_actions
CNN_OUT = 512                # cnn_output_dim in the module
IMG = 16                     # spatial size of the synthetic images
CIN = 3                      # RGB
KH = KW = 3                  # conv kernel
K = KH * KW * CIN            # 27 raw im2col depth
K_PAD = 32                   # zero-padded im2col depth (MXU-friendly)
HW = IMG * IMG               # 256 spatial positions
OUT_SLAB = 128               # lane-dense packed output width
H_OFF = 64                   # lane offset of the hidden state inside the slab
MAX_TILE_B = 16              # caps per-step f32 conv intermediate at ~8 MiB
VMEM_LIMIT_BYTES = 32 * 1024 * 1024


# ------------------------------ Pallas kernel --------------------------------
def fused_agent_kernel(p_ref, h_ref,
                       cw_ref, cb_ref,
                       w1_ref, b1_ref,
                       wi_ref, bi_ref, wh_ref, bh_ref,
                       wo_ref, bo_ref,
                       out_ref):
    """Per TILE_B images: conv-as-matmul + ReLU + GAP + fc1 + ReLU + GRU + fc2.

    p_ref : (TB, HW, K_PAD) bf16 im2col patches
    h_ref : (TB, 1, H)      f32  previous hidden state
    cw_ref: (K_PAD, 512) bf16,  cb_ref: (1, 512) f32
    w1_ref: (512, H) bf16 (1/HW folded in), b1_ref: (1, H) f32
    wi_ref/wh_ref: (H, 3H) bf16 packed GRU gates (r|z|n), bi/bh: (1, 3H) f32
    wo_ref: (H, 128) bf16 fc2 projection (q lanes only), bo_ref: (1, 128) f32
    out_ref: (TB, 1, 128) packed slab (q at lanes [0,6), h at [64,96))
    """
    f32 = jnp.float32
    bf16 = jnp.bfloat16
    H = RNN_HIDDEN_DIM
    TB = p_ref.shape[0]

    # --- synthetic CNN backbone: 3x3 conv (as one matmul) + ReLU --------------
    p = p_ref[...].reshape(TB * HW, K_PAD)                           # bf16
    y = jnp.dot(p, cw_ref[...], preferred_element_type=f32)          # (TB*HW, 512)
    y = jnp.maximum(y + cb_ref[...], 0.0)                            # bias + ReLU

    # --- global average pool: sublane-axis sum (1/HW folded into w1) ---------
    feat = jnp.sum(y.reshape(TB, HW, CNN_OUT), axis=1)               # (TB, 512) f32

    # --- fc1 + ReLU -----------------------------------------------------------
    x = jnp.dot(feat.astype(bf16), w1_ref[...],
                preferred_element_type=f32) + b1_ref[...]
    x = jnp.maximum(x, 0.0)                                          # (TB, H)

    # --- single GRU step, packed gates, PyTorch gate order (r, z, n) ---------
    h = h_ref[...].reshape(TB, H)                                    # (TB, H) f32
    gi = jnp.dot(x.astype(bf16), wi_ref[...],
                 preferred_element_type=f32) + bi_ref[...]           # (TB, 3H)
    gh = jnp.dot(h.astype(bf16), wh_ref[...],
                 preferred_element_type=f32) + bh_ref[...]           # (TB, 3H)
    r = jax.nn.sigmoid(gi[:, 0:H] + gh[:, 0:H])
    z = jax.nn.sigmoid(gi[:, H:2 * H] + gh[:, H:2 * H])
    n = jnp.tanh(gi[:, 2 * H:3 * H] + r * gh[:, 2 * H:3 * H])
    h_new = (1.0 - z) * n + z * h                                    # (TB, H) f32

    # --- fc2 into q lanes; exact hidden passthrough stored directly ----------
    slab = jnp.dot(h_new.astype(bf16), wo_ref[...],
                   preferred_element_type=f32) + bo_ref[...]         # (TB, 128)
    out_ref[...] = slab.reshape(TB, 1, OUT_SLAB)
    out_ref[:, :, H_OFF:H_OFF + H] = h_new.reshape(TB, 1, H)         # bit-exact h


# ------------------------------ JAX wrappers ---------------------------------
def _im2col_nhwc_bf16(image_nhwc):
    """(B, H, W, C) NHWC -> (B, H*W, K_PAD) bf16 im2col patches (zero-padded)."""
    B, Hh, Ww, C = image_nhwc.shape
    padded = jnp.pad(image_nhwc, ((0, 0), (1, 1), (1, 1), (0, 0)))
    padded = padded.astype(jnp.bfloat16)        # cast first: halves concat traffic
    cols = []
    for ki in range(KH):                        # matches the conv_w row layout
        for kj in range(KW):
            cols.append(padded[:, ki:ki + Hh, kj:kj + Ww, :])
    patches = jnp.concatenate(cols, axis=-1).reshape(B, Hh * Ww, KH * KW * C)
    return jnp.pad(patches, ((0, 0), (0, 0), (0, K_PAD - K)))


def _pick_tile_b(B):
    """>= 2 grid steps (v7x dual TC) and bounded f32 intermediate (<= ~8 MiB)."""
    return int(max(1, min(MAX_TILE_B, pl.cdiv(B, 2))))


def asl_rnn_agent_forward(inputs, hidden_state, params):
    image_input, other_input = inputs
    del other_input  # dead code in the reference forward (x is overwritten before use)
    img = jnp.squeeze(image_input, axis=1)             # (B, IMG, IMG, CIN), NHWC kept
    B = img.shape[0]
    H = RNN_HIDDEN_DIM

    patches = _im2col_nhwc_bf16(img)                   # (B, HW, K_PAD) bf16
    h_in = hidden_state.reshape(-1, H).reshape(B, 1, H)

    tile_b = _pick_tile_b(B)
    grid_b = int(pl.cdiv(B, tile_b))
    b_pad = grid_b * tile_b
    if b_pad != B:                                      # pad batch to a tile multiple
        patches = jnp.pad(patches, ((0, b_pad - B), (0, 0), (0, 0)))
        h_in = jnp.pad(h_in, ((0, b_pad - B), (0, 0), (0, 0)))

    flops = b_pad * (2 * HW * K_PAD * CNN_OUT + HW * CNN_OUT
                     + 2 * CNN_OUT * H + 2 * 2 * H * 3 * H + 2 * H * OUT_SLAB)
    bytes_accessed = (b_pad * HW * K_PAD * 2 + b_pad * H * 4
                      + K_PAD * CNN_OUT * 2 + CNN_OUT * 4
                      + CNN_OUT * H * 2 + H * 4
                      + 2 * H * 3 * H * 2 + 2 * 3 * H * 4
                      + H * OUT_SLAB * 2 + OUT_SLAB * 4
                      + b_pad * OUT_SLAB * 4)

    # resident (constant-index) weights: single-buffered to save VMEM headroom
    res1 = pl.Buffered(1)

    slab = pl.pallas_call(
        fused_agent_kernel,
        out_shape=jax.ShapeDtypeStruct((b_pad, 1, OUT_SLAB), jnp.float32),
        grid=(grid_b,),
        in_specs=[
            pl.BlockSpec((tile_b, HW, K_PAD), lambda b: (b, 0, 0)),   # patches
            pl.BlockSpec((tile_b, 1, H), lambda b: (b, 0, 0)),        # h_in
            pl.BlockSpec((K_PAD, CNN_OUT), lambda b: (0, 0), pipeline_mode=res1),
            pl.BlockSpec((1, CNN_OUT), lambda b: (0, 0), pipeline_mode=res1),
            pl.BlockSpec((CNN_OUT, H), lambda b: (0, 0), pipeline_mode=res1),
            pl.BlockSpec((1, H), lambda b: (0, 0), pipeline_mode=res1),
            pl.BlockSpec((H, 3 * H), lambda b: (0, 0), pipeline_mode=res1),
            pl.BlockSpec((1, 3 * H), lambda b: (0, 0), pipeline_mode=res1),
            pl.BlockSpec((H, 3 * H), lambda b: (0, 0), pipeline_mode=res1),
            pl.BlockSpec((1, 3 * H), lambda b: (0, 0), pipeline_mode=res1),
            pl.BlockSpec((H, OUT_SLAB), lambda b: (0, 0), pipeline_mode=res1),
            pl.BlockSpec((1, OUT_SLAB), lambda b: (0, 0), pipeline_mode=res1),
        ],
        out_specs=pl.BlockSpec((tile_b, 1, OUT_SLAB), lambda b: (b, 0, 0)),
        compiler_params=pltpu.CompilerParams(
            dimension_semantics=("parallel",),          # v7x: one tile per TC
            vmem_limit_bytes=VMEM_LIMIT_BYTES),
        cost_estimate=pl.CostEstimate(flops=flops,
                                      transcendentals=b_pad * 3 * H,
                                      bytes_accessed=bytes_accessed),
    )(patches, h_in,
      params["conv_w"], params["conv_b"],
      params["w1"], params["b1"],
      params["w_i"], params["b_i"], params["w_h"], params["b_h"],
      params["w_out"], params["b_out"])

    slab = slab.reshape(b_pad, OUT_SLAB)[:B]
    q = slab[:, :N_ACTIONS]
    h = slab[:, H_OFF:H_OFF + H]
    return q, h


# -------------------- pure-JAX reference (same dtype policy) ------------------
def reference_forward(patches, h_in, params):
    f32, bf16 = jnp.float32, jnp.bfloat16
    B = patches.shape[0]
    H = RNN_HIDDEN_DIM
    p = patches.reshape(B * HW, K_PAD)
    y = jnp.maximum(jnp.dot(p, params["conv_w"], preferred_element_type=f32)
                    + params["conv_b"], 0.0)
    feat = jnp.sum(y.reshape(B, HW, CNN_OUT), axis=1)
    x = jnp.maximum(jnp.dot(feat.astype(bf16), params["w1"],
                            preferred_element_type=f32) + params["b1"], 0.0)
    h = h_in.reshape(B, H)
    gi = jnp.dot(x.astype(bf16), params["w_i"], preferred_element_type=f32) + params["b_i"]
    gh = jnp.dot(h.astype(bf16), params["w_h"], preferred_element_type=f32) + params["b_h"]
    r = jax.nn.sigmoid(gi[:, :H] + gh[:, :H])
    z = jax.nn.sigmoid(gi[:, H:2 * H] + gh[:, H:2 * H])
    n = jnp.tanh(gi[:, 2 * H:] + r * gh[:, 2 * H:])
    h_new = (1.0 - z) * n + z * h
    q = (jnp.dot(h_new.astype(bf16), params["w_out"],
                 preferred_element_type=f32) + params["b_out"])[:, :N_ACTIONS]
    return q, h_new


# --------------------------- deterministic params ----------------------------
def init_params(key):
    """Raw parameters mirroring the PyTorch parameterization (per-gate GRU)."""
    ks = jax.random.split(key, 18)
    H = RNN_HIDDEN_DIM
    s = 0.05

    def nrm(k, shape):
        return s * jax.random.normal(k, shape, jnp.float32)

    return {
        "conv_w": nrm(ks[0], (K, CNN_OUT)),
        "conv_b": nrm(ks[1], (1, CNN_OUT)),
        "w1": nrm(ks[2], (CNN_OUT, H)),
        "b1": nrm(ks[3], (1, H)),
        # GRU input-to-hidden (gate order r, z, n), pre-transposed to (H, H)
        "w_ir": nrm(ks[4], (H, H)), "w_iz": nrm(ks[5], (H, H)), "w_in": nrm(ks[6], (H, H)),
        "b_ir": nrm(ks[7], (1, H)), "b_iz": nrm(ks[8], (1, H)), "b_in": nrm(ks[9], (1, H)),
        # GRU hidden-to-hidden
        "w_hr": nrm(ks[10], (H, H)), "w_hz": nrm(ks[11], (H, H)), "w_hn": nrm(ks[12], (H, H)),
        "b_hr": nrm(ks[13], (1, H)), "b_hz": nrm(ks[14], (1, H)), "b_hn": nrm(ks[15], (1, H)),
        "w2": nrm(ks[16], (H, N_ACTIONS)),
        "b2": nrm(ks[17], (1, N_ACTIONS)),
    }


def pack_params(p):
    """One-time repacking into the kernel-friendly layout (bf16 weights)."""
    H = RNN_HIDDEN_DIM
    bf16 = jnp.bfloat16
    # conv weights: pad im2col depth 27 -> 32 with zero rows, cast to bf16
    conv_w = jnp.pad(p["conv_w"], ((0, K_PAD - K), (0, 0))).astype(bf16)
    # fc1 with the global-average-pool scale (1/HW) folded in
    w1 = (p["w1"] / float(HW)).astype(bf16)
    # output projection: lanes [0,6) = fc2; lanes [64,96) are written directly
    w_out = jnp.zeros((H, OUT_SLAB), jnp.float32)
    w_out = w_out.at[:, :N_ACTIONS].set(p["w2"])
    b_out = jnp.zeros((1, OUT_SLAB), jnp.float32)
    b_out = b_out.at[:, :N_ACTIONS].set(p["b2"])
    return {
        "conv_w": conv_w,
        "conv_b": p["conv_b"],
        "w1": w1, "b1": p["b1"],
        "w_i": jnp.concatenate([p["w_ir"], p["w_iz"], p["w_in"]], axis=1).astype(bf16),
        "b_i": jnp.concatenate([p["b_ir"], p["b_iz"], p["b_in"]], axis=1),
        "w_h": jnp.concatenate([p["w_hr"], p["w_hz"], p["w_hn"]], axis=1).astype(bf16),
        "b_h": jnp.concatenate([p["b_hr"], p["b_hz"], p["b_hn"]], axis=1),
        "w_out": w_out.astype(bf16), "b_out": b_out,
    }


# ---------------------------------- main -------------------------------------
if __name__ == "__main__":
    key = jax.random.PRNGKey(0)
    k_par, k_img, k_oth = jax.random.split(key, 3)

    B = 2
    params = pack_params(init_params(k_par))

    # inputs[0]: (B, 1, H, W, 3) images (NHWC after squeeze); inputs[1]: misc vector
    image = jax.random.normal(k_img, (B, 1, IMG, IMG, CIN), jnp.float32)
    other = jax.random.normal(k_oth, (B, 8), jnp.float32)
    # init_hidden() -> zeros, broadcast to the batch then reshape(-1, H)
    hidden = jnp.zeros((B, RNN_HIDDEN_DIM), jnp.float32)

    fwd = jax.jit(asl_rnn_agent_forward)
    q, h = fwd((image, other), hidden, params)
    jax.block_until_ready((q, h))

    assert q.shape == (B, N_ACTIONS), q.shape
    assert h.shape == (B, RNN_HIDDEN_DIM), h.shape
    assert q.dtype == jnp.float32 and h.dtype == jnp.float32
    assert bool(jnp.all(jnp.isfinite(q))) and bool(jnp.all(jnp.isfinite(h)))

    # numerical check against a pure-JAX reference with the same dtype policy
    patches_ref = _im2col_nhwc_bf16(jnp.squeeze(image, axis=1))
    q_ref, h_ref = reference_forward(patches_ref, hidden.reshape(B, 1, RNN_HIDDEN_DIM), params)
    assert bool(jnp.allclose(q, q_ref, rtol=2e-2, atol=2e-2)), "q mismatch vs reference"
    assert bool(jnp.allclose(h, h_ref, rtol=2e-2, atol=2e-2)), "h mismatch vs reference"

    print("KERNEL_OK")
</pallas_src>

<mosaic_0001>
module attributes {stable_mosaic.version = 11 : i64} {
  func.func @fused_agent_kernel(%arg0: i32, %arg1: memref<1x256x32xbf16, #tpu.memory_space<vmem>>, %arg2: memref<1x1x32xf32, #tpu.memory_space<vmem>>, %arg3: memref<32x512xbf16, #tpu.memory_space<vmem>>, %arg4: memref<1x512xf32, #tpu.memory_space<vmem>>, %arg5: memref<512x32xbf16, #tpu.memory_space<vmem>>, %arg6: memref<1x32xf32, #tpu.memory_space<vmem>>, %arg7: memref<32x96xbf16, #tpu.memory_space<vmem>>, %arg8: memref<1x96xf32, #tpu.memory_space<vmem>>, %arg9: memref<32x96xbf16, #tpu.memory_space<vmem>>, %arg10: memref<1x96xf32, #tpu.memory_space<vmem>>, %arg11: memref<32x128xbf16, #tpu.memory_space<vmem>>, %arg12: memref<1x128xf32, #tpu.memory_space<vmem>>, %arg13: memref<1x1x128xf32, #tpu.memory_space<vmem>>) attributes {dimension_semantics = [#tpu.dimension_semantics<parallel>], iteration_bounds = array<i64: 2>, scalar_prefetch = 0 : i64, scratch_operands = 0 : i64, tpu.core_type = #tpu.core_type<tc>, window_params = [{transform_indices = @transform_0, window_bounds = array<i64: 1, 256, 32>}, {transform_indices = @transform_1, window_bounds = array<i64: 1, 1, 32>}, {pipeline_mode = #tpu.pipeline_mode<synchronous>, transform_indices = @transform_2, window_bounds = array<i64: 32, 512>}, {pipeline_mode = #tpu.pipeline_mode<synchronous>, transform_indices = @transform_3, window_bounds = array<i64: 1, 512>}, {pipeline_mode = #tpu.pipeline_mode<synchronous>, transform_indices = @transform_4, window_bounds = array<i64: 512, 32>}, {pipeline_mode = #tpu.pipeline_mode<synchronous>, transform_indices = @transform_5, window_bounds = array<i64: 1, 32>}, {pipeline_mode = #tpu.pipeline_mode<synchronous>, transform_indices = @transform_6, window_bounds = array<i64: 32, 96>}, {pipeline_mode = #tpu.pipeline_mode<synchronous>, transform_indices = @transform_7, window_bounds = array<i64: 1, 96>}, {pipeline_mode = #tpu.pipeline_mode<synchronous>, transform_indices = @transform_8, window_bounds = array<i64: 32, 96>}, {pipeline_mode = #tpu.pipeline_mode<synchronous>, transform_indices = @transform_9, window_bounds = array<i64: 1, 96>}, {pipeline_mode = #tpu.pipeline_mode<synchronous>, transform_indices = @transform_10, window_bounds = array<i64: 32, 128>}, {pipeline_mode = #tpu.pipeline_mode<synchronous>, transform_indices = @transform_11, window_bounds = array<i64: 1, 128>}, {transform_indices = @transform_12, window_bounds = array<i64: 1, 1, 128>}]} {
    %c0 = arith.constant 0 : index
    %c0_0 = arith.constant 0 : index
    %c0_1 = arith.constant 0 : index
    %0 = vector.load %arg1[%c0, %c0_0, %c0_1] : memref<1x256x32xbf16, #tpu.memory_space<vmem>>, vector<1x256x32xbf16>
    %1 = vector.shape_cast %0 : vector<1x256x32xbf16> to vector<256x32xbf16>
    %c0_2 = arith.constant 0 : index
    %c0_3 = arith.constant 0 : index
    %2 = vector.load %arg3[%c0_2, %c0_3] : memref<32x512xbf16, #tpu.memory_space<vmem>>, vector<32x512xbf16>
    %cst = arith.constant dense<0.000000e+00> : vector<256x512xf32>
    %3 = tpu.matmul %1, %2, %cst {dimension_numbers = #tpu.dot_dimension_numbers<[1], [0], [0], [1], [0, 0, 1, 1], [], []>} : vector<256x32xbf16>, vector<32x512xbf16>, vector<256x512xf32> -> vector<256x512xf32>
    %c0_4 = arith.constant 0 : index
    %c0_5 = arith.constant 0 : index
    %4 = vector.load %arg4[%c0_4, %c0_5] : memref<1x512xf32, #tpu.memory_space<vmem>>, vector<1x512xf32>
    %5 = vector.broadcast %4 : vector<1x512xf32> to vector<256x512xf32>
    %6 = arith.addf %3, %5 : vector<256x512xf32>
    %cst_6 = arith.constant 0.000000e+00 : f32
    %7 = vector.broadcast %cst_6 : f32 to vector<256x512xf32>
    %8 = arith.maximumf %6, %7 : vector<256x512xf32>
    %9 = vector.shape_cast %8 : vector<256x512xf32> to vector<1x256x512xf32>
    %cst_7 = arith.constant dense<0.000000e+00> : vector<1x512xf32>
    %10 = vector.multi_reduction <add>, %9, %cst_7 [1] : vector<1x256x512xf32> to vector<1x512xf32>
    %11 = arith.truncf %10 : vector<1x512xf32> to vector<1x512xbf16>
    %c0_8 = arith.constant 0 : index
    %c0_9 = arith.constant 0 : index
    %12 = vector.load %arg5[%c0_8, %c0_9] : memref<512x32xbf16, #tpu.memory_space<vmem>>, vector<512x32xbf16>
    %cst_10 = arith.constant dense<0.000000e+00> : vector<1x32xf32>
    %13 = tpu.matmul %11, %12, %cst_10 {dimension_numbers = #tpu.dot_dimension_numbers<[1], [0], [0], [1], [0, 0, 1, 1], [], []>} : vector<1x512xbf16>, vector<512x32xbf16>, vector<1x32xf32> -> vector<1x32xf32>
    %c0_11 = arith.constant 0 : index
    %c0_12 = arith.constant 0 : index
    %14 = vector.load %arg6[%c0_11, %c0_12] : memref<1x32xf32, #tpu.memory_space<vmem>>, vector<1x32xf32>
    %15 = arith.addf %13, %14 : vector<1x32xf32>
    %cst_13 = arith.constant 0.000000e+00 : f32
    %16 = vector.broadcast %cst_13 : f32 to vector<1x32xf32>
    %17 = arith.maximumf %15, %16 : vector<1x32xf32>
    %c0_14 = arith.constant 0 : index
    %c0_15 = arith.constant 0 : index
    %c0_16 = arith.constant 0 : index
    %18 = vector.load %arg2[%c0_14, %c0_15, %c0_16] : memref<1x1x32xf32, #tpu.memory_space<vmem>>, vector<1x1x32xf32>
    %19 = vector.shape_cast %18 : vector<1x1x32xf32> to vector<1x32xf32>
    %20 = arith.truncf %17 : vector<1x32xf32> to vector<1x32xbf16>
    %c0_17 = arith.constant 0 : index
    %c0_18 = arith.constant 0 : index
    %21 = vector.load %arg7[%c0_17, %c0_18] : memref<32x96xbf16, #tpu.memory_space<vmem>>, vector<32x96xbf16>
    %cst_19 = arith.constant dense<0.000000e+00> : vector<1x96xf32>
    %22 = tpu.matmul %20, %21, %cst_19 {dimension_numbers = #tpu.dot_dimension_numbers<[1], [0], [0], [1], [0, 0, 1, 1], [], []>} : vector<1x32xbf16>, vector<32x96xbf16>, vector<1x96xf32> -> vector<1x96xf32>
    %c0_20 = arith.constant 0 : index
    %c0_21 = arith.constant 0 : index
    %23 = vector.load %arg8[%c0_20, %c0_21] : memref<1x96xf32, #tpu.memory_space<vmem>>, vector<1x96xf32>
    %24 = arith.addf %22, %23 : vector<1x96xf32>
    %25 = arith.truncf %19 : vector<1x32xf32> to vector<1x32xbf16>
    %c0_22 = arith.constant 0 : index
    %c0_23 = arith.constant 0 : index
    %26 = vector.load %arg9[%c0_22, %c0_23] : memref<32x96xbf16, #tpu.memory_space<vmem>>, vector<32x96xbf16>
    %cst_24 = arith.constant dense<0.000000e+00> : vector<1x96xf32>
    %27 = tpu.matmul %25, %26, %cst_24 {dimension_numbers = #tpu.dot_dimension_numbers<[1], [0], [0], [1], [0, 0, 1, 1], [], []>} : vector<1x32xbf16>, vector<32x96xbf16>, vector<1x96xf32> -> vector<1x96xf32>
    %c0_25 = arith.constant 0 : index
    %c0_26 = arith.constant 0 : index
    %28 = vector.load %arg10[%c0_25, %c0_26] : memref<1x96xf32, #tpu.memory_space<vmem>>, vector<1x96xf32>
    %29 = arith.addf %27, %28 : vector<1x96xf32>
    %30 = vector.extract_strided_slice %24 {offsets = [0, 0], sizes = [1, 32], strides = [1, 1]} : vector<1x96xf32> to vector<1x32xf32>
    %31 = vector.extract_strided_slice %29 {offsets = [0, 0], sizes = [1, 32], strides = [1, 1]} : vector<1x96xf32> to vector<1x32xf32>
    %32 = arith.addf %30, %31 : vector<1x32xf32>
    %33 = arith.negf %32 : vector<1x32xf32>
    %34 = math.exp %33 : vector<1x32xf32>
    %cst_27 = arith.constant 1.000000e+00 : f32
    %35 = vector.broadcast %cst_27 : f32 to vector<1x32xf32>
    %36 = arith.addf %35, %34 : vector<1x32xf32>
    %37 = arith.divf %35, %36 : vector<1x32xf32>
    %38 = vector.extract_strided_slice %24 {offsets = [0, 32], sizes = [1, 32], strides = [1, 1]} : vector<1x96xf32> to vector<1x32xf32>
    %39 = vector.extract_strided_slice %29 {offsets = [0, 32], sizes = [1, 32], strides = [1, 1]} : vector<1x96xf32> to vector<1x32xf32>
    %40 = arith.addf %38, %39 : vector<1x32xf32>
    %41 = arith.negf %40 : vector<1x32xf32>
    %42 = math.exp %41 : vector<1x32xf32>
    %cst_28 = arith.constant 1.000000e+00 : f32
    %43 = vector.broadcast %cst_28 : f32 to vector<1x32xf32>
    %44 = arith.addf %43, %42 : vector<1x32xf32>
    %45 = arith.divf %43, %44 : vector<1x32xf32>
    %46 = vector.extract_strided_slice %24 {offsets = [0, 64], sizes = [1, 32], strides = [1, 1]} : vector<1x96xf32> to vector<1x32xf32>
    %47 = vector.extract_strided_slice %29 {offsets = [0, 64], sizes = [1, 32], strides = [1, 1]} : vector<1x96xf32> to vector<1x32xf32>
    %48 = arith.mulf %37, %47 : vector<1x32xf32>
    %49 = arith.addf %46, %48 : vector<1x32xf32>
    %50 = math.tanh %49 : vector<1x32xf32>
    %cst_29 = arith.constant 1.000000e+00 : f32
    %51 = vector.broadcast %cst_29 : f32 to vector<1x32xf32>
    %52 = arith.subf %51, %45 : vector<1x32xf32>
    %53 = arith.mulf %52, %50 : vector<1x32xf32>
    %54 = arith.mulf %45, %19 : vector<1x32xf32>
    %55 = arith.addf %53, %54 : vector<1x32xf32>
    %56 = arith.truncf %55 : vector<1x32xf32> to vector<1x32xbf16>
    %c0_30 = arith.constant 0 : index
    %c0_31 = arith.constant 0 : index
    %57 = vector.load %arg11[%c0_30, %c0_31] : memref<32x128xbf16, #tpu.memory_space<vmem>>, vector<32x128xbf16>
    %cst_32 = arith.constant dense<0.000000e+00> : vector<1x128xf32>
    %58 = tpu.matmul %56, %57, %cst_32 {dimension_numbers = #tpu.dot_dimension_numbers<[1], [0], [0], [1], [0, 0, 1, 1], [], []>} : vector<1x32xbf16>, vector<32x128xbf16>, vector<1x128xf32> -> vector<1x128xf32>
    %c0_33 = arith.constant 0 : index
    %c0_34 = arith.constant 0 : index
    %59 = vector.load %arg12[%c0_33, %c0_34] : memref<1x128xf32, #tpu.memory_space<vmem>>, vector<1x128xf32>
    %60 = arith.addf %58, %59 : vector<1x128xf32>
    %61 = vector.shape_cast %60 : vector<1x128xf32> to vector<1x1x128xf32>
    %c0_35 = arith.constant 0 : index
    %c0_36 = arith.constant 0 : index
    %c0_37 = arith.constant 0 : index
    %62 = vector.load %arg13[%c0_35, %c0_36, %c0_37] : memref<1x1x128xf32, #tpu.memory_space<vmem>>, vector<1x1x128xf32>
    tpu.vector_store %arg13[%c0_35, %c0_36, %c0_37], %61 {strides = array<i32>} : memref<1x1x128xf32, #tpu.memory_space<vmem>>, vector<1x1x128xf32>,
    %63 = vector.shape_cast %55 : vector<1x32xf32> to vector<1x1x32xf32>
    %c0_38 = arith.constant 0 : index
    %c0_39 = arith.constant 0 : index
    %c64 = arith.constant 64 : index
    %64 = vector.load %arg13[%c0_38, %c0_39, %c64] : memref<1x1x128xf32, #tpu.memory_space<vmem>>, vector<1x1x32xf32>
    tpu.vector_store %arg13[%c0_38, %c0_39, %c64], %63 {strides = array<i32>} : memref<1x1x128xf32, #tpu.memory_space<vmem>>, vector<1x1x32xf32>,
    return
  }
  func.func @transform_0(%arg0: i32) -> (i32, i32, i32) {
    %c0_i32 = arith.constant 0 : i32
    %c0_i32_0 = arith.constant 0 : i32
    %c0_i32_1 = arith.constant 0 : i32
    return %arg0, %c0_i32, %c0_i32_0 : i32, i32, i32
  }
  func.func @transform_1(%arg0: i32) -> (i32, i32, i32) {
    %c0_i32 = arith.constant 0 : i32
    %c0_i32_0 = arith.constant 0 : i32
    %c0_i32_1 = arith.constant 0 : i32
    return %arg0, %c0_i32, %c0_i32_0 : i32, i32, i32
  }
  func.func @transform_2(%arg0: i32) -> (i32, i32) {
    %c0_i32 = arith.constant 0 : i32
    %c0_i32_0 = arith.constant 0 : i32
    %c0_i32_1 = arith.constant 0 : i32
    return %c0_i32, %c0_i32_0 : i32, i32
  }
  func.func @transform_3(%arg0: i32) -> (i32, i32) {
    %c0_i32 = arith.constant 0 : i32
    %c0_i32_0 = arith.constant 0 : i32
    %c0_i32_1 = arith.constant 0 : i32
    return %c0_i32, %c0_i32_0 : i32, i32
  }
  func.func @transform_4(%arg0: i32) -> (i32, i32) {
    %c0_i32 = arith.constant 0 : i32
    %c0_i32_0 = arith.constant 0 : i32
    %c0_i32_1 = arith.constant 0 : i32
    return %c0_i32, %c0_i32_0 : i32, i32
  }
  func.func @transform_5(%arg0: i32) -> (i32, i32) {
    %c0_i32 = arith.constant 0 : i32
    %c0_i32_0 = arith.constant 0 : i32
    %c0_i32_1 = arith.constant 0 : i32
    return %c0_i32, %c0_i32_0 : i32, i32
  }
  func.func @transform_6(%arg0: i32) -> (i32, i32) {
    %c0_i32 = arith.constant 0 : i32
    %c0_i32_0 = arith.constant 0 : i32
    %c0_i32_1 = arith.constant 0 : i32
    return %c0_i32, %c0_i32_0 : i32, i32
  }
  func.func @transform_7(%arg0: i32) -> (i32, i32) {
    %c0_i32 = arith.constant 0 : i32
    %c0_i32_0 = arith.constant 0 : i32
    %c0_i32_1 = arith.constant 0 : i32
    return %c0_i32, %c0_i32_0 : i32, i32
  }
  func.func @transform_8(%arg0: i32) -> (i32, i32) {
    %c0_i32 = arith.constant 0 : i32
    %c0_i32_0 = arith.constant 0 : i32
    %c0_i32_1 = arith.constant 0 : i32
    return %c0_i32, %c0_i32_0 : i32, i32
  }
  func.func @transform_9(%arg0: i32) -> (i32, i32) {
    %c0_i32 = arith.constant 0 : i32
    %c0_i32_0 = arith.constant 0 : i32
    %c0_i32_1 = arith.constant 0 : i32
    return %c0_i32, %c0_i32_0 : i32, i32
  }
  func.func @transform_10(%arg0: i32) -> (i32, i32) {
    %c0_i32 = arith.constant 0 : i32
    %c0_i32_0 = arith.constant 0 : i32
    %c0_i32_1 = arith.constant 0 : i32
    return %c0_i32, %c0_i32_0 : i32, i32
  }
  func.func @transform_11(%arg0: i32) -> (i32, i32) {
    %c0_i32 = arith.constant 0 : i32
    %c0_i32_0 = arith.constant 0 : i32
    %c0_i32_1 = arith.constant 0 : i32
    return %c0_i32, %c0_i32_0 : i32, i32
  }
  func.func @transform_12(%arg0: i32) -> (i32, i32, i32) {
    %c0_i32 = arith.constant 0 : i32
    %c0_i32_0 = arith.constant 0 : i32
    %c0_i32_1 = arith.constant 0 : i32
    return %arg0, %c0_i32, %c0_i32_0 : i32, i32, i32
  }
}

</mosaic_0001>

<bundles_post_ra>
// kernel: asl_rnn_agent_forward.1
= control target key start
LH: loop header
LB: loop body
LE: loop exit
PB: predicated region body
PF: predicated region fallthrough
CT: control target
= control target key end

     0   :  { %s2294_s21 = smov 0   ;;  %s2715_s0 = inlined_call_operand.vmem [shape: bf16[2,256,32], index: 0, kind: input, shape index: {}]   ;;  %s2716_s1 = inlined_call_operand.vmem [shape: f32[2,1,32], index: 1, kind: input, shape index: {}]   ;;  %s2717_s2 = inlined_call_operand.vmem [shape: bf16[32,512], index: 2, kind: input, shape index: {}]   ;;  %s2718_s3 = inlined_call_operand.vmem [shape: f32[1,512], index: 3, kind: input, shape index: {}]   ;;  %s2719_s4 = inlined_call_operand.vmem [shape: bf16[512,32], index: 4, kind: input, shape index: {}]   ;;  %s2720_s5 = inlined_call_operand.vmem [shape: f32[1,32], index: 5, kind: input, shape index: {}]   ;;  %s2721_s6 = inlined_call_operand.vmem [shape: bf16[32,96], index: 6, kind: input, shape index: {}]   ;;  %s2722_s7 = inlined_call_operand.vmem [shape: f32[1,96], index: 7, kind: input, shape index: {}]   ;;  %s2723_s8 = inlined_call_operand.vmem [shape: bf16[32,96], index: 8, kind: input, shape index: {}]   ;;  %s2724_s9 = inlined_call_operand.vmem [shape: f32[1,96], index: 9, kind: input, shape index: {}]   ;;  %s2725_s10 = inlined_call_operand.vmem [shape: bf16[32,128], index: 10, kind: input, shape index: {}]   ;;  %s2726_s11 = inlined_call_operand.vmem [shape: f32[1,128], index: 11, kind: input, shape index: {}]   ;;  %s2727_s12 = inlined_call_operand.vmem [shape: f32[2,1,128], index: 12, kind: output, shape index: {}]  }
   0x1 LB: > { %s1944_s22 = sadd.s32 4294967295, %s2221_s21   ;;  %p1948_p0 = scmp.ge.s32.totalorder %s2221_s21, 1  ;;  %s2221_s21 = sphi %s2294_s21, %s22_s21  }
   0x2   : > { %p370_p1 = scmp.lt.s32.totalorder %s2221_s21, 3 }
   0x4   : > { %p371_p2 = pnand %p1948_p0, %p370_p1 }
   0x5   : > { %v2143_v0 = vld [vmem:[%s2717_s2 + $0x4] ss:$16 sps:$4 sm:$0xff] (!%p371_p2)   ;;  %p413_p3 = scmp.lt.s32.totalorder (!%p371_p2), %s1944_s22, 1  ;;  %v2145_v1 = vld [vmem:[%s2717_s2 + $0xc] ss:$16 sps:$4 sm:$0xff] (!%p371_p2)   ;;  %v2223_v2 = vmov (!%p371_p2), 0   ;;  %v467_v49 = vlaneseq (!%p371_p2) }
   0x6   : > { %374 = sbr.rel (%p371_p2) target bundleno = 1424 (0x590), region = 68  ;;  %688 = vmatprep.mubr.bf16.mxu0 (!%p371_p2), %v2223_v2  ;;  %881 = vmatprep.mubr.bf16.mxu1 (!%p371_p2), %v2223_v2  ;;  %v2147_v3 = vld [vmem:[%s2717_s2] ss:$16 sps:$4 sm:$0xff] (!%p371_p2)   ;;  %v2148_v4 = vld [vmem:[%s2717_s2 + $0x8] ss:$16 sps:$4 sm:$0xff] (!%p371_p2)   ;;  %vm607_vm0 = vcmask (!%p371_p2), 261120  }
   0x7   : > { %656 = vmatprep.subr.bf16.mxu0 (!%p371_p2), %v2143_v0  ;;  %849 = vmatprep.subr.bf16.mxu1 (!%p371_p2), %v2145_v1  ;;  %v2149_v5 = vld [vmem:[%s2717_s2 + $0x24] ss:$16 sps:$4 sm:$0xff] (!%p371_p2)   ;;  %v2151_v6 = vld [vmem:[%s2717_s2 + $0x2c] ss:$16 sps:$4 sm:$0xff] (!%p371_p2)   ;;  %v2153_v7 = vld [vmem:[%s2717_s2 + $0x20] ss:$16 sps:$4 sm:$0xff] (!%p371_p2)  }
   0x8   : > { %657 = vmatpush1.bf16.msra.mxu0 (!%p371_p2), %v2147_v3  ;;  %850 = vmatpush1.bf16.msra.mxu1 (!%p371_p2), %v2148_v4  ;;  %v2154_v8 = vld [vmem:[%s2717_s2 + $0x28] ss:$16 sps:$4 sm:$0xff] (!%p371_p2)   ;;  %v2171_v23 = vld [vmem:[%s2719_s4 + $0x40] sm:$0xff] (!%p371_p2)   ;;  %v2179_v33 = vld [vmem:[%s2719_s4 + $0x50] sm:$0xff] (!%p371_p2)   ;;  %v2486_v50 = vshrl.u32 (!%p371_p2), %v467_v49, 7  ;;  %vm2225_vm1 = vmmov (!%p371_p2), 0  }
   0x9   : > { %658 = vmatprep.subr.bf16.mxu0 (!%p371_p2), %v2149_v5  ;;  %851 = vmatprep.subr.bf16.mxu1 (!%p371_p2), %v2151_v6  ;;  %v2172_v24 = vld [vmem:[%s2719_s4] sm:$0xff] (!%p371_p2)   ;;  %v2175_v29 = vld [vmem:[%s2719_s4 + $0x48] sm:$0xff] (!%p371_p2)   ;;  %v2180_v34 = vld [vmem:[%s2719_s4 + $0x10] sm:$0xff] (!%p371_p2)   ;;  %s2226_s28 = smov (!%p371_p2), 64   ;;  %s2227_s17 = smov (!%p371_p2), 96   ;;  %vm1886_vm2 = vcmask (!%p371_p2), 778752  }
   0xa   : > { %v2173_v25 = vld [vmem:[%s2719_s4 + $0xc0] sm:$0xff] (!%p371_p2)   ;;  %v2176_v30 = vld [vmem:[%s2719_s4 + $0x8] sm:$0xff] (!%p371_p2)   ;;  %v2181_v35 = vld [vmem:[%s2719_s4 + $0xd0] sm:$0xff] (!%p371_p2)   ;;  %v469_v55 = vsub.s32 (!%p371_p2), 0, %v2486_v50  ;;  %v477_v56 = vsub.s32 (!%p371_p2), 2, %v2486_v50  ;;  %v473_v58 = vsub.s32 (!%p371_p2), 1, %v2486_v50 }
   0xb   : > { %v2174_v26 = vld [vmem:[%s2719_s4 + $0x80] sm:$0xff] (!%p371_p2)   ;;  %v2177_v31 = vld [vmem:[%s2719_s4 + $0xc8] sm:$0xff] (!%p371_p2)   ;;  %v2182_v36 = vld [vmem:[%s2719_s4 + $0x90] sm:$0xff] (!%p371_p2)   ;;  %v481_v59 = vsub.s32 (!%p371_p2), 3, %v2486_v50  ;;  %s2228_s18 = smov (!%p371_p2), 32  }
   0xc   : > { %659 = vmatpush1.bf16.msra.mxu0 (!%p371_p2), %v2153_v7  ;;  %852 = vmatpush1.bf16.msra.mxu1 (!%p371_p2), %v2154_v8  ;;  %v2178_v32 = vld [vmem:[%s2719_s4 + $0x88] sm:$0xff] (!%p371_p2)   ;;  %v2183_v37 = vld [vmem:[%s2719_s4 + $0x58] sm:$0xff] (!%p371_p2)   ;;  %v2187_v41 = vld [vmem:[%s2719_s4 + $0x60] sm:$0xff] (!%p371_p2)  }
   0xd   : > { %s2729_s22 = smov (!%p413_p3, %s1944_s22), 1  ;;  %2052 = vmatprep.subr.bf16.mxu0 %v2171_v23  ;;  %2074 = vmatprep.subr.bf16.mxu1 %v2173_v25  ;;  %v2184_v38 = vld [vmem:[%s2719_s4 + $0x18] sm:$0xff]   ;;  %v2188_v42 = vld [vmem:[%s2719_s4 + $0x20] sm:$0xff]   ;;  %v2191_v45 = vld [vmem:[%s2719_s4 + $0x68] sm:$0xff]  }
   0xe   : > { %s2051_s19 = sshll.u32 %s2729_s22, 7  ;;  %v2185_v39 = vld [vmem:[%s2719_s4 + $0xd8] sm:$0xff]   ;;  %v2189_v43 = vld [vmem:[%s2719_s4 + $0xe0] sm:$0xff]   ;;  %v2192_v46 = vld [vmem:[%s2719_s4 + $0x28] sm:$0xff]   ;;  %s420_s15 = scalar_lea.vmem %s2716_s1, %s2729_s22 }
   0xf   : > { %s2334_s26 = scalar_lea.vmem %s2715_s0, %s2051_s19  ;;  %v2186_v40 = vld [vmem:[%s2719_s4 + $0x98] sm:$0xff]   ;;  %v2190_v44 = vld [vmem:[%s2719_s4 + $0xa0] sm:$0xff]   ;;  %v2193_v47 = vld [vmem:[%s2719_s4 + $0xe8] sm:$0xff]   ;;  %s423_s25 = scalar_lea.vmem %s2727_s12, %s2729_s22 }
  0x10   : > { %v2155_v9 = vld [vmem:[%s2334_s26] sm:$0xff]   ;;  %v2156_v10 = vld [vmem:[%s2334_s26 + $0x8] sm:$0xff]   ;;  %v2157_v11 = vld [vmem:[%s2334_s26 + $0x10] sm:$0xff]  }
  0x11   : > { %1975 = vmatmul.mubr.msk.bf16.vlgmr.msra.gmra.mrb[0].mxu0 %vm607_vm0, %v2155_v9  ;;  %1991 = vmatmul.mubr.msk.bf16.vlgmr.msra.gmra.mrb[0].mxu1 %vm607_vm0, %v2155_v9  ;;  %v2158_v12 = vld [vmem:[%s2334_s26 + $0x18] sm:$0xff]   ;;  %v2159_v13 = vld [vmem:[%s2334_s26 + $0x20] sm:$0xff]   ;;  %v2160_v14 = vld [vmem:[%s2334_s26 + $0x28] sm:$0xff]  }
  0x12   : > { %698 = vmatprep.mubr.bf16.mxu0 %v2223_v2  ;;  %891 = vmatprep.mubr.bf16.mxu1 %v2223_v2  ;;  %v2161_v15 = vld [vmem:[%s2334_s26 + $0x30] sm:$0xff]   ;;  %v2162_v16 = vld [vmem:[%s2334_s26 + $0x38] sm:$0xff]   ;;  %v2163_v17 = vld [vmem:[%s2334_s26 + $0x40] sm:$0xff]  }
  0x13   : > { %v2164_v18 = vld [vmem:[%s2334_s26 + $0x48] sm:$0xff]   ;;  %v2165_v19 = vld [vmem:[%s2334_s26 + $0x50] sm:$0xff]   ;;  %v2166_v20 = vld [vmem:[%s2334_s26 + $0x58] sm:$0xff]   ;;  %2053 = vmatpush3.bf16.msra.mxu0 %v2172_v24  ;;  %2075 = vmatpush3.bf16.msra.mxu1 %v2174_v26 }
  0x14   : > { %v2167_v21 = vld [vmem:[%s2334_s26 + $0x60] sm:$0xff]   ;;  %v2168_v22 = vld [vmem:[%s2334_s26 + $0x68] sm:$0xff]   ;;  %v2169_v27 = vld [vmem:[%s2334_s26 + $0x70] sm:$0xff]   ;;  %2054 = vmatprep.subr.bf16.mxu0 %v2175_v29  ;;  %2076 = vmatprep.subr.bf16.mxu1 %v2177_v31 }
  0x15   : > { %v2170_v28 = vld [vmem:[%s2334_s26 + $0x78] sm:$0xff]   ;;  %v2194_v48 = vld [vmem:[%s2719_s4 + $0xa8] sm:$0xff]   ;;  %v2195_v51 = vld [vmem:[%s2719_s4 + $0x70] sm:$0xff]  }
  0x16   : > { %v2196_v52 = vld [vmem:[%s2719_s4 + $0x30] sm:$0xff]   ;;  %v465_v57 = vld [vmem:[%s2718_s3] sm:$0xf] }
  0x17   : > { %2055 = vmatpush3.bf16.msra.mxu0 %v2176_v30  ;;  %2077 = vmatpush3.bf16.msra.mxu1 %v2178_v32  ;;  %v2197_v53 = vld [vmem:[%s2719_s4 + $0xf0] sm:$0xff]   ;;  %v2509_v60 = vrot.slane %v465_v57, %v469_v55  ;;  %v2511_v61 = vrot.slane %v465_v57, %v477_v56  ;;  %v2513_v62 = vrot.slane %v465_v57, %v473_v58  ;;  %v1822_v50 = vld [vmem:[%s2726_s11] sm:$0x1] }
  0x18   : > { %2056 = vmatprep.subr.bf16.mxu0 %v2179_v33  ;;  %2078 = vmatprep.subr.bf16.mxu1 %v2181_v35  ;;  %v2198_v54 = vld [vmem:[%s2719_s4 + $0xb0] sm:$0xff]   ;;  %v2515_v63 = vrot.slane %v465_v57, %v481_v59 }
  0x19   : > { %1976 = vmatmul.mubr.msk.bf16.gmra.mrb[4].mxu0 %vm607_vm0, %v2156_v10  ;;  %1992 = vmatmul.mubr.msk.bf16.gmra.mrb[4].mxu1 %vm607_vm0, %v2156_v10 }
  0x1a   : > { %708 = vmatprep.mubr.bf16.mxu0 %v2223_v2  ;;  %901 = vmatprep.mubr.bf16.mxu1 %v2223_v2 }
  0x1b   : > { %2057 = vmatpush3.bf16.msra.mxu0 %v2180_v34  ;;  %2079 = vmatpush3.bf16.msra.mxu1 %v2182_v36 }
  0x1c   : > { %2058 = vmatprep.subr.bf16.mxu0 %v2183_v37  ;;  %2080 = vmatprep.subr.bf16.mxu1 %v2185_v39 }
  0x1f   : > { %2059 = vmatpush3.bf16.msra.mxu0 %v2184_v38  ;;  %2081 = vmatpush3.bf16.msra.mxu1 %v2186_v40 }
  0x20   : > { %2060 = vmatprep.subr.bf16.mxu0 %v2187_v41  ;;  %2082 = vmatprep.subr.bf16.mxu1 %v2189_v43 }
  0x21   : > { %1977 = vmatmul.mubr.msk.bf16.gmra.mrb[8].mxu0 %vm607_vm0, %v2157_v11  ;;  %1993 = vmatmul.mubr.msk.bf16.gmra.mrb[8].mxu1 %vm607_vm0, %v2157_v11 }
  0x22   : > { %718 = vmatprep.mubr.bf16.mxu0 %v2223_v2  ;;  %911 = vmatprep.mubr.bf16.mxu1 %v2223_v2 }
  0x23   : > { %2061 = vmatpush3.bf16.msra.mxu0 %v2188_v42  ;;  %2083 = vmatpush3.bf16.msra.mxu1 %v2190_v44  ;;  %v2199_v44 = vld [vmem:[%s2719_s4 + $0x78] sm:$0xff]  }
  0x24   : > { %2062 = vmatprep.subr.bf16.mxu0 %v2191_v45  ;;  %2084 = vmatprep.subr.bf16.mxu1 %v2193_v47  ;;  %v2201_v45 = vld [vmem:[%s2719_s4 + $0xf8] sm:$0xff]  }
  0x27   : > { %2063 = vmatpush3.bf16.msra.mxu0 %v2192_v46  ;;  %2085 = vmatpush3.bf16.msra.mxu1 %v2194_v48 }
  0x28   : > { %2064 = vmatprep.subr.bf16.mxu0 %v2195_v51  ;;  %2086 = vmatprep.subr.bf16.mxu1 %v2197_v53  ;;  %v2200_v51 = vld [vmem:[%s2719_s4 + $0x38] sm:$0xff]  }
  0x29   : > { %1978 = vmatmul.mubr.msk.bf16.gmra.mrb[12].mxu0 %vm607_vm0, %v2158_v12  ;;  %1994 = vmatmul.mubr.msk.bf16.gmra.mrb[12].mxu1 %vm607_vm0, %v2158_v12 }
  0x2a   : > { %728 = vmatprep.mubr.bf16.mxu0 %v2223_v2  ;;  %921 = vmatprep.mubr.bf16.mxu1 %v2223_v2 }
  0x2b   : > { %2065 = vmatpush3.bf16.msra.mxu0 %v2196_v52  ;;  %2087 = vmatpush3.bf16.msra.mxu1 %v2198_v54  ;;  %v2202_v52 = vld [vmem:[%s2719_s4 + $0xb8] sm:$0xff]  }
  0x2c   : > { %2066 = vmatprep.subr.bf16.mxu0 %v2199_v44  ;;  %2088 = vmatprep.subr.bf16.mxu1 %v2201_v45 }
  0x2f   : > { %2067 = vmatpush3.bf16.msra.mxu0 %v2200_v51  ;;  %2089 = vmatpush3.bf16.msra.mxu1 %v2202_v52 }
  0x31   : > { %1979 = vmatmul.mubr.msk.bf16.gmra.mrb[16].mxu0 %vm607_vm0, %v2159_v13  ;;  %1995 = vmatmul.mubr.msk.bf16.gmra.mrb[16].mxu1 %vm607_vm0, %v2159_v13 }
  0x32   : > { %738 = vmatprep.mubr.bf16.mxu0 %v2223_v2  ;;  %931 = vmatprep.mubr.bf16.mxu1 %v2223_v2 }
  0x39   : > { %1980 = vmatmul.mubr.msk.bf16.gmra.mrb[20].mxu0 %vm607_vm0, %v2160_v14  ;;  %1996 = vmatmul.mubr.msk.bf16.gmra.mrb[20].mxu1 %vm607_vm0, %v2160_v14 }
  0x3a   : > { %748 = vmatprep.mubr.bf16.mxu0 %v2223_v2  ;;  %941 = vmatprep.mubr.bf16.mxu1 %v2223_v2 }
  0x41   : > { %1981 = vmatmul.mubr.msk.bf16.gmra.mrb[24].mxu0 %vm607_vm0, %v2161_v15  ;;  %1997 = vmatmul.mubr.msk.bf16.gmra.mrb[24].mxu1 %vm607_vm0, %v2161_v15 }
  0x42   : > { %758 = vmatprep.mubr.bf16.mxu0 %v2223_v2  ;;  %951 = vmatprep.mubr.bf16.mxu1 %v2223_v2 }
  0x49   : > { %1982 = vmatmul.mubr.msk.bf16.gmra.mrb[28].mxu0 %vm607_vm0, %v2162_v16  ;;  %1998 = vmatmul.mubr.msk.bf16.gmra.mrb[28].mxu1 %vm607_vm0, %v2162_v16 }
  0x4a   : > { %768 = vmatprep.mubr.bf16.mxu0 %v2223_v2  ;;  %961 = vmatprep.mubr.bf16.mxu1 %v2223_v2 }
  0x51   : > { %1983 = vmatmul.mubr.msk.bf16.gmra.mrb[32].mxu0 %vm607_vm0, %v2163_v17  ;;  %1999 = vmatmul.mubr.msk.bf16.gmra.mrb[32].mxu1 %vm607_vm0, %v2163_v17 }
  0x52   : > { %778 = vmatprep.mubr.bf16.mxu0 %v2223_v2  ;;  %971 = vmatprep.mubr.bf16.mxu1 %v2223_v2 }
  0x59   : > { %1984 = vmatmul.mubr.msk.bf16.gmra.mrb[36].mxu0 %vm607_vm0, %v2164_v18  ;;  %2000 = vmatmul.mubr.msk.bf16.gmra.mrb[36].mxu1 %vm607_vm0, %v2164_v18 }
  0x5a   : > { %788 = vmatprep.mubr.bf16.mxu0 %v2223_v2  ;;  %981 = vmatprep.mubr.bf16.mxu1 %v2223_v2 }
  0x61   : > { %1985 = vmatmul.mubr.msk.bf16.gmra.mrb[40].mxu0 %vm607_vm0, %v2165_v19  ;;  %2001 = vmatmul.mubr.msk.bf16.gmra.mrb[40].mxu1 %vm607_vm0, %v2165_v19 }
  0x62   : > { %798 = vmatprep.mubr.bf16.mxu0 %v2223_v2  ;;  %991 = vmatprep.mubr.bf16.mxu1 %v2223_v2 }
  0x69   : > { %1986 = vmatmul.mubr.msk.bf16.gmra.mrb[44].mxu0 %vm607_vm0, %v2166_v20  ;;  %2002 = vmatmul.mubr.msk.bf16.gmra.mrb[44].mxu1 %vm607_vm0, %v2166_v20 }
  0x6a   : > { %808 = vmatprep.mubr.bf16.mxu0 %v2223_v2  ;;  %1001 = vmatprep.mubr.bf16.mxu1 %v2223_v2 }
  0x71   : > { %1987 = vmatmul.mubr.msk.bf16.gmra.mrb[48].mxu0 %vm607_vm0, %v2167_v21  ;;  %2003 = vmatmul.mubr.msk.bf16.gmra.mrb[48].mxu1 %vm607_vm0, %v2167_v21 }
  0x72   : > { %818 = vmatprep.mubr.bf16.mxu0 %v2223_v2  ;;  %1011 = vmatprep.mubr.bf16.mxu1 %v2223_v2 }
  0x79   : > { %1988 = vmatmul.mubr.msk.bf16.gmra.mrb[52].mxu0 %vm607_vm0, %v2168_v22  ;;  %2004 = vmatmul.mubr.msk.bf16.gmra.mrb[52].mxu1 %vm607_vm0, %v2168_v22 }
  0x7a   : > { %828 = vmatprep.mubr.bf16.mxu0 %v2223_v2  ;;  %1021 = vmatprep.mubr.bf16.mxu1 %v2223_v2 }
  0x81   : > { %1989 = vmatmul.mubr.msk.bf16.gmra.mrb[56].mxu0 %vm607_vm0, %v2169_v27  ;;  %2005 = vmatmul.mubr.msk.bf16.gmra.mrb[56].mxu1 %vm607_vm0, %v2169_v27 }
  0x82   : > { %838 = vmatprep.mubr.bf16.mxu0 %v2223_v2  ;;  %1031 = vmatprep.mubr.bf16.mxu1 %v2223_v2 }
  0x89   : > { %1990 = vmatmul.mubr.msk.bf16.gmra.mrb[60].mxu0 %vm607_vm0, %v2170_v28  ;;  %2006 = vmatmul.mubr.msk.bf16.gmra.mrb[60].mxu1 %vm607_vm0, %v2170_v28 }
  0xe4   : > { %v690_v0 = vpop.f32.mrb[0].mxu0  ;;  %v883_v1 = vpop.f32.mrb[0].mxu1 }
  0xe5   : > { %v691_v2 = vadd.f32 %v690_v0, %v2509_v60  ;;  %v884_v3 = vadd.f32 %v883_v1, %v2511_v61  ;;  %v692_v4 = vpop.f32.mrb[1].mxu0  ;;  %v885_v5 = vpop.f32.mrb[1].mxu1 }
  0xe6   : > { %v693_v6 = vadd.f32 %v692_v4, %v2513_v62  ;;  %v886_v7 = vadd.f32 %v885_v5, %v2515_v63  ;;  %v694_v8 = vpop.f32.mrb[2].mxu0  ;;  %v887_v9 = vpop.f32.mrb[2].mxu1 }
  0xe7   : > { %v1044_v10 = vmax.f32 %v884_v3, 0.0  ;;  %v695_v11 = vadd.f32 %v694_v8, %v2509_v60  ;;  %v888_v12 = vadd.f32 %v887_v9, %v2511_v61  ;;  %v696_v13 = vpop.f32.mrb[3].mxu0  ;;  %v889_v14 = vpop.f32.mrb[3].mxu1  ;;  %v1042_v18 = vmax.f32 %v691_v2, 0.0 }
  0xe8   : > { %v1045_v15 = vmax.f32 %v886_v7, 0.0  ;;  %v697_v16 = vadd.f32 %v696_v13, %v2513_v62  ;;  %v890_v17 = vadd.f32 %v889_v14, %v2515_v63  ;;  %v1043_v21 = vmax.f32 %v693_v6, 0.0 }
  0xe9   : > { %v1046_v19 = vmax.f32 %v695_v11, 0.0  ;;  %v1048_v20 = vmax.f32 %v888_v12, 0.0 }
  0xea   : > { %v1047_v22 = vmax.f32 %v697_v16, 0.0  ;;  %v1049_v23 = vmax.f32 %v890_v17, 0.0  ;;  %v2224_v16 = vmov 0.0  }
  0xeb   : > { %v1170_v24 = vadd.f32 %v1046_v19, %v1042_v18  ;;  %v1244_v25 = vadd.f32 %v1048_v20, %v1044_v10  ;;  %2113 = vmatprep.subr.bf16.mxu1 %v2224_v16  ;;  %2105 = vmatprep.subr.bf16.mxu0 %v2224_v16 }
  0xec   : > { %v1207_v26 = vadd.f32 %v1047_v22, %v1043_v21  ;;  %v1281_v27 = vadd.f32 %v1049_v23, %v1045_v15  ;;  %v700_v28 = vpop.f32.mrb[4].mxu0  ;;  %v893_v29 = vpop.f32.mrb[4].mxu1 }
  0xed   : > { %v701_v30 = vadd.f32 %v700_v28, %v2509_v60  ;;  %v894_v31 = vadd.f32 %v893_v29, %v2511_v61  ;;  %v702_v32 = vpop.f32.mrb[5].mxu0  ;;  %v895_v33 = vpop.f32.mrb[5].mxu1 }
  0xee   : > { %v703_v34 = vadd.f32 %v702_v32, %v2513_v62  ;;  %v896_v35 = vadd.f32 %v895_v33, %v2515_v63  ;;  %v704_v36 = vpop.f32.mrb[6].mxu0  ;;  %v897_v37 = vpop.f32.mrb[6].mxu1 }
  0xef   : > { %v1050_v38 = vmax.f32 %v701_v30, 0.0  ;;  %v1052_v39 = vmax.f32 %v894_v31, 0.0  ;;  %v705_v40 = vadd.f32 %v704_v36, %v2509_v60  ;;  %v898_v41 = vadd.f32 %v897_v37, %v2511_v61  ;;  %v706_v42 = vpop.f32.mrb[7].mxu0  ;;  %v899_v43 = vpop.f32.mrb[7].mxu1 }
  0xf0   : > { %v1051_v46 = vmax.f32 %v703_v34, 0.0  ;;  %v1053_v47 = vmax.f32 %v896_v35, 0.0  ;;  %v707_v48 = vadd.f32 %v706_v42, %v2513_v62  ;;  %v900_v49 = vadd.f32 %v899_v43, %v2515_v63 }
  0xf1   : > { %v1171_v53 = vadd.f32 %v1170_v24, %v1050_v38  ;;  %v1245_v54 = vadd.f32 %v1244_v25, %v1052_v39  ;;  %v1054_v56 = vmax.f32 %v705_v40, 0.0  ;;  %v1056_v57 = vmax.f32 %v898_v41, 0.0 }
  0xf2   : > { %v1208_v58 = vadd.f32 %v1207_v26, %v1051_v46  ;;  %v1282_v59 = vadd.f32 %v1281_v27, %v1053_v47  ;;  %v1055_v0 = vmax.f32 %v707_v48, 0.0  ;;  %v1057_v1 = vmax.f32 %v900_v49, 0.0 }
  0xf3   : > { %v1172_v2 = vadd.f32 %v1171_v53, %v1054_v56  ;;  %v1246_v3 = vadd.f32 %v1245_v54, %v1056_v57 }
  0xf4   : > { %v1209_v4 = vadd.f32 %v1208_v58, %v1055_v0  ;;  %v1283_v5 = vadd.f32 %v1282_v59, %v1057_v1  ;;  %v710_v6 = vpop.f32.mrb[8].mxu0  ;;  %v903_v7 = vpop.f32.mrb[8].mxu1 }
  0xf5   : > { %v711_v8 = vadd.f32 %v710_v6, %v2509_v60  ;;  %v904_v9 = vadd.f32 %v903_v7, %v2511_v61  ;;  %v712_v10 = vpop.f32.mrb[9].mxu0  ;;  %v905_v11 = vpop.f32.mrb[9].mxu1 }
  0xf6   : > { %v713_v12 = vadd.f32 %v712_v10, %v2513_v62  ;;  %v906_v13 = vadd.f32 %v905_v11, %v2515_v63  ;;  %v714_v14 = vpop.f32.mrb[10].mxu0  ;;  %v907_v15 = vpop.f32.mrb[10].mxu1 }
  0xf7   : > { %v1058_v17 = vmax.f32 %v711_v8, 0.0  ;;  %v1060_v18 = vmax.f32 %v904_v9, 0.0  ;;  %v715_v19 = vadd.f32 %v714_v14, %v2509_v60  ;;  %v908_v20 = vadd.f32 %v907_v15, %v2511_v61  ;;  %v716_v21 = vpop.f32.mrb[11].mxu0  ;;  %v909_v22 = vpop.f32.mrb[11].mxu1 }
  0xf8   : > { %v1059_v23 = vmax.f32 %v713_v12, 0.0  ;;  %v1061_v24 = vmax.f32 %v906_v13, 0.0  ;;  %v717_v25 = vadd.f32 %v716_v21, %v2513_v62  ;;  %v910_v26 = vadd.f32 %v909_v22, %v2515_v63 }
  0xf9   : > { %v1173_v27 = vadd.f32 %v1172_v2, %v1058_v17  ;;  %v1247_v28 = vadd.f32 %v1246_v3, %v1060_v18  ;;  %v1062_v29 = vmax.f32 %v715_v19, 0.0  ;;  %v1064_v30 = vmax.f32 %v908_v20, 0.0 }
  0xfa   : > { %v1210_v31 = vadd.f32 %v1209_v4, %v1059_v23  ;;  %v1284_v32 = vadd.f32 %v1283_v5, %v1061_v24  ;;  %v1063_v33 = vmax.f32 %v717_v25, 0.0  ;;  %v1065_v34 = vmax.f32 %v910_v26, 0.0 }
  0xfb   : > { %v1174_v35 = vadd.f32 %v1173_v27, %v1062_v29  ;;  %v1248_v36 = vadd.f32 %v1247_v28, %v1064_v30 }
  0xfc   : > { %v1211_v37 = vadd.f32 %v1210_v31, %v1063_v33  ;;  %v1285_v38 = vadd.f32 %v1284_v32, %v1065_v34  ;;  %v720_v39 = vpop.f32.mrb[12].mxu0  ;;  %v913_v40 = vpop.f32.mrb[12].mxu1 }
  0xfd   : > { %v721_v41 = vadd.f32 %v720_v39, %v2509_v60  ;;  %v914_v42 = vadd.f32 %v913_v40, %v2511_v61  ;;  %v722_v43 = vpop.f32.mrb[13].mxu0  ;;  %v915_v44 = vpop.f32.mrb[13].mxu1 }
  0xfe   : > { %v723_v45 = vadd.f32 %v722_v43, %v2513_v62  ;;  %v916_v46 = vadd.f32 %v915_v44, %v2515_v63  ;;  %v724_v47 = vpop.f32.mrb[14].mxu0  ;;  %v917_v48 = vpop.f32.mrb[14].mxu1 }
  0xff   : > { %v1066_v49 = vmax.f32 %v721_v41, 0.0  ;;  %v1068_v51 = vmax.f32 %v914_v42, 0.0  ;;  %v725_v52 = vadd.f32 %v724_v47, %v2509_v60  ;;  %v918_v53 = vadd.f32 %v917_v48, %v2511_v61  ;;  %v726_v54 = vpop.f32.mrb[15].mxu0  ;;  %v919_v56 = vpop.f32.mrb[15].mxu1 }
 0x100   : > { %v1067_v57 = vmax.f32 %v723_v45, 0.0  ;;  %v1069_v58 = vmax.f32 %v916_v46, 0.0  ;;  %v727_v59 = vadd.f32 %v726_v54, %v2513_v62  ;;  %v920_v0 = vadd.f32 %v919_v56, %v2515_v63 }
 0x101   : > { %v1175_v1 = vadd.f32 %v1174_v35, %v1066_v49  ;;  %v1249_v2 = vadd.f32 %v1248_v36, %v1068_v51  ;;  %v1070_v3 = vmax.f32 %v725_v52, 0.0  ;;  %v1072_v4 = vmax.f32 %v918_v53, 0.0 }
 0x102   : > { %v1212_v5 = vadd.f32 %v1211_v37, %v1067_v57  ;;  %v1286_v6 = vadd.f32 %v1285_v38, %v1069_v58  ;;  %v1071_v7 = vmax.f32 %v727_v59, 0.0  ;;  %v1073_v8 = vmax.f32 %v920_v0, 0.0 }
 0x103   : > { %v1176_v9 = vadd.f32 %v1175_v1, %v1070_v3  ;;  %v1250_v10 = vadd.f32 %v1249_v2, %v1072_v4 }
 0x104   : > { %v1213_v11 = vadd.f32 %v1212_v5, %v1071_v7  ;;  %v1287_v12 = vadd.f32 %v1286_v6, %v1073_v8  ;;  %v730_v13 = vpop.f32.mrb[16].mxu0  ;;  %v923_v14 = vpop.f32.mrb[16].mxu1 }
 0x105   : > { %v731_v15 = vadd.f32 %v730_v13, %v2509_v60  ;;  %v924_v17 = vadd.f32 %v923_v14, %v2511_v61  ;;  %v732_v18 = vpop.f32.mrb[17].mxu0  ;;  %v925_v19 = vpop.f32.mrb[17].mxu1 }
 0x106   : > { %v733_v20 = vadd.f32 %v732_v18, %v2513_v62  ;;  %v926_v21 = vadd.f32 %v925_v19, %v2515_v63  ;;  %v734_v22 = vpop.f32.mrb[18].mxu0  ;;  %v927_v23 = vpop.f32.mrb[18].mxu1 }
 0x107   : > { %v1074_v24 = vmax.f32 %v731_v15, 0.0  ;;  %v1076_v25 = vmax.f32 %v924_v17, 0.0  ;;  %v735_v26 = vadd.f32 %v734_v22, %v2509_v60  ;;  %v928_v27 = vadd.f32 %v927_v23, %v2511_v61  ;;  %v736_v28 = vpop.f32.mrb[19].mxu0  ;;  %v929_v29 = vpop.f32.mrb[19].mxu1 }
 0x108   : > { %v1075_v30 = vmax.f32 %v733_v20, 0.0  ;;  %v1077_v31 = vmax.f32 %v926_v21, 0.0  ;;  %v737_v32 = vadd.f32 %v736_v28, %v2513_v62  ;;  %v930_v33 = vadd.f32 %v929_v29, %v2515_v63 }
 0x109   : > { %v1177_v34 = vadd.f32 %v1176_v9, %v1074_v24  ;;  %v1251_v35 = vadd.f32 %v1250_v10, %v1076_v25  ;;  %v1078_v36 = vmax.f32 %v735_v26, 0.0  ;;  %v1080_v37 = vmax.f32 %v928_v27, 0.0 }
 0x10a   : > { %v1214_v38 = vadd.f32 %v1213_v11, %v1075_v30  ;;  %v1288_v39 = vadd.f32 %v1287_v12, %v1077_v31  ;;  %v1079_v40 = vmax.f32 %v737_v32, 0.0  ;;  %v1081_v41 = vmax.f32 %v930_v33, 0.0 }
 0x10b   : > { %v1178_v42 = vadd.f32 %v1177_v34, %v1078_v36  ;;  %v1252_v43 = vadd.f32 %v1251_v35, %v1080_v37 }
 0x10c   : > { %v1215_v44 = vadd.f32 %v1214_v38, %v1079_v40  ;;  %v1289_v45 = vadd.f32 %v1288_v39, %v1081_v41  ;;  %v740_v46 = vpop.f32.mrb[20].mxu0  ;;  %v933_v47 = vpop.f32.mrb[20].mxu1 }
 0x10d   : > { %v741_v48 = vadd.f32 %v740_v46, %v2509_v60  ;;  %v934_v49 = vadd.f32 %v933_v47, %v2511_v61  ;;  %v742_v51 = vpop.f32.mrb[21].mxu0  ;;  %v935_v52 = vpop.f32.mrb[21].mxu1 }
 0x10e   : > { %v743_v53 = vadd.f32 %v742_v51, %v2513_v62  ;;  %v936_v54 = vadd.f32 %v935_v52, %v2515_v63  ;;  %v744_v56 = vpop.f32.mrb[22].mxu0  ;;  %v937_v57 = vpop.f32.mrb[22].mxu1 }
 0x10f   : > { %v1082_v58 = vmax.f32 %v741_v48, 0.0  ;;  %v1084_v59 = vmax.f32 %v934_v49, 0.0  ;;  %v745_v0 = vadd.f32 %v744_v56, %v2509_v60  ;;  %v938_v1 = vadd.f32 %v937_v57, %v2511_v61  ;;  %v746_v2 = vpop.f32.mrb[23].mxu0  ;;  %v939_v3 = vpop.f32.mrb[23].mxu1 }
 0x110   : > { %v1083_v4 = vmax.f32 %v743_v53, 0.0  ;;  %v1085_v5 = vmax.f32 %v936_v54, 0.0  ;;  %v747_v6 = vadd.f32 %v746_v2, %v2513_v62  ;;  %v940_v7 = vadd.f32 %v939_v3, %v2515_v63 }
 0x111   : > { %v1179_v8 = vadd.f32 %v1178_v42, %v1082_v58  ;;  %v1253_v9 = vadd.f32 %v1252_v43, %v1084_v59  ;;  %v1086_v10 = vmax.f32 %v745_v0, 0.0  ;;  %v1088_v11 = vmax.f32 %v938_v1, 0.0 }
 0x112   : > { %v1216_v12 = vadd.f32 %v1215_v44, %v1083_v4  ;;  %v1290_v13 = vadd.f32 %v1289_v45, %v1085_v5  ;;  %v1087_v14 = vmax.f32 %v747_v6, 0.0  ;;  %v1089_v15 = vmax.f32 %v940_v7, 0.0 }
 0x113   : > { %v1180_v17 = vadd.f32 %v1179_v8, %v1086_v10  ;;  %v1254_v18 = vadd.f32 %v1253_v9, %v1088_v11 }
 0x114   : > { %v1217_v19 = vadd.f32 %v1216_v12, %v1087_v14  ;;  %v1291_v20 = vadd.f32 %v1290_v13, %v1089_v15  ;;  %v750_v21 = vpop.f32.mrb[24].mxu0  ;;  %v943_v22 = vpop.f32.mrb[24].mxu1 }
 0x115   : > { %v751_v23 = vadd.f32 %v750_v21, %v2509_v60  ;;  %v944_v24 = vadd.f32 %v943_v22, %v2511_v61  ;;  %v752_v25 = vpop.f32.mrb[25].mxu0  ;;  %v945_v26 = vpop.f32.mrb[25].mxu1 }
 0x116   : > { %v753_v27 = vadd.f32 %v752_v25, %v2513_v62  ;;  %v946_v28 = vadd.f32 %v945_v26, %v2515_v63  ;;  %v754_v29 = vpop.f32.mrb[26].mxu0  ;;  %v947_v30 = vpop.f32.mrb[26].mxu1 }
 0x117   : > { %v1090_v31 = vmax.f32 %v751_v23, 0.0  ;;  %v1092_v32 = vmax.f32 %v944_v24, 0.0  ;;  %v755_v33 = vadd.f32 %v754_v29, %v2509_v60  ;;  %v948_v34 = vadd.f32 %v947_v30, %v2511_v61  ;;  %v756_v35 = vpop.f32.mrb[27].mxu0  ;;  %v949_v36 = vpop.f32.mrb[27].mxu1 }
 0x118   : > { %v1091_v37 = vmax.f32 %v753_v27, 0.0  ;;  %v1093_v38 = vmax.f32 %v946_v28, 0.0  ;;  %v757_v39 = vadd.f32 %v756_v35, %v2513_v62  ;;  %v950_v40 = vadd.f32 %v949_v36, %v2515_v63 }
 0x119   : > { %v1181_v41 = vadd.f32 %v1180_v17, %v1090_v31  ;;  %v1255_v42 = vadd.f32 %v1254_v18, %v1092_v32  ;;  %v1094_v43 = vmax.f32 %v755_v33, 0.0  ;;  %v1096_v44 = vmax.f32 %v948_v34, 0.0 }
 0x11a   : > { %v1218_v45 = vadd.f32 %v1217_v19, %v1091_v37  ;;  %v1292_v46 = vadd.f32 %v1291_v20, %v1093_v38  ;;  %v1095_v47 = vmax.f32 %v757_v39, 0.0  ;;  %v1097_v48 = vmax.f32 %v950_v40, 0.0 }
 0x11b   : > { %v1182_v49 = vadd.f32 %v1181_v41, %v1094_v43  ;;  %v1256_v51 = vadd.f32 %v1255_v42, %v1096_v44 }
 0x11c   : > { %v1219_v52 = vadd.f32 %v1218_v45, %v1095_v47  ;;  %v1293_v53 = vadd.f32 %v1292_v46, %v1097_v48  ;;  %v760_v54 = vpop.f32.mrb[28].mxu0  ;;  %v953_v56 = vpop.f32.mrb[28].mxu1 }
 0x11d   : > { %v761_v57 = vadd.f32 %v760_v54, %v2509_v60  ;;  %v954_v58 = vadd.f32 %v953_v56, %v2511_v61  ;;  %v762_v59 = vpop.f32.mrb[29].mxu0  ;;  %v955_v0 = vpop.f32.mrb[29].mxu1 }
 0x11e   : > { %v763_v1 = vadd.f32 %v762_v59, %v2513_v62  ;;  %v956_v2 = vadd.f32 %v955_v0, %v2515_v63  ;;  %v764_v3 = vpop.f32.mrb[30].mxu0  ;;  %v957_v4 = vpop.f32.mrb[30].mxu1 }
 0x11f   : > { %v1098_v5 = vmax.f32 %v761_v57, 0.0  ;;  %v1100_v6 = vmax.f32 %v954_v58, 0.0  ;;  %v765_v7 = vadd.f32 %v764_v3, %v2509_v60  ;;  %v958_v8 = vadd.f32 %v957_v4, %v2511_v61  ;;  %v766_v9 = vpop.f32.mrb[31].mxu0  ;;  %v959_v10 = vpop.f32.mrb[31].mxu1 }
 0x120   : > { %v1099_v11 = vmax.f32 %v763_v1, 0.0  ;;  %v1101_v12 = vmax.f32 %v956_v2, 0.0  ;;  %v767_v13 = vadd.f32 %v766_v9, %v2513_v62  ;;  %v960_v14 = vadd.f32 %v959_v10, %v2515_v63 }
 0x121   : > { %v1183_v15 = vadd.f32 %v1182_v49, %v1098_v5  ;;  %v1257_v17 = vadd.f32 %v1256_v51, %v1100_v6  ;;  %v1102_v18 = vmax.f32 %v765_v7, 0.0  ;;  %v1104_v19 = vmax.f32 %v958_v8, 0.0 }
 0x122   : > { %v1220_v20 = vadd.f32 %v1219_v52, %v1099_v11  ;;  %v1294_v21 = vadd.f32 %v1293_v53, %v1101_v12  ;;  %v1103_v22 = vmax.f32 %v767_v13, 0.0  ;;  %v1105_v23 = vmax.f32 %v960_v14, 0.0 }
 0x123   : > { %v1184_v24 = vadd.f32 %v1183_v15, %v1102_v18  ;;  %v1258_v25 = vadd.f32 %v1257_v17, %v1104_v19 }
 0x124   : > { %v1221_v26 = vadd.f32 %v1220_v20, %v1103_v22  ;;  %v1295_v27 = vadd.f32 %v1294_v21, %v1105_v23  ;;  %v770_v28 = vpop.f32.mrb[32].mxu0  ;;  %v963_v29 = vpop.f32.mrb[32].mxu1 }
 0x125   : > { %v771_v30 = vadd.f32 %v770_v28, %v2509_v60  ;;  %v964_v31 = vadd.f32 %v963_v29, %v2511_v61  ;;  %v772_v32 = vpop.f32.mrb[33].mxu0  ;;  %v965_v33 = vpop.f32.mrb[33].mxu1 }
 0x126   : > { %v773_v34 = vadd.f32 %v772_v32, %v2513_v62  ;;  %v966_v35 = vadd.f32 %v965_v33, %v2515_v63  ;;  %v774_v36 = vpop.f32.mrb[34].mxu0  ;;  %v967_v37 = vpop.f32.mrb[34].mxu1 }
 0x127   : > { %v1106_v38 = vmax.f32 %v771_v30, 0.0  ;;  %v1108_v39 = vmax.f32 %v964_v31, 0.0  ;;  %v775_v40 = vadd.f32 %v774_v36, %v2509_v60  ;;  %v968_v41 = vadd.f32 %v967_v37, %v2511_v61  ;;  %v776_v42 = vpop.f32.mrb[35].mxu0  ;;  %v969_v43 = vpop.f32.mrb[35].mxu1 }
 0x128   : > { %v1107_v44 = vmax.f32 %v773_v34, 0.0  ;;  %v1109_v45 = vmax.f32 %v966_v35, 0.0  ;;  %v777_v46 = vadd.f32 %v776_v42, %v2513_v62  ;;  %v970_v47 = vadd.f32 %v969_v43, %v2515_v63 }
 0x129   : > { %v1185_v48 = vadd.f32 %v1184_v24, %v1106_v38  ;;  %v1259_v49 = vadd.f32 %v1258_v25, %v1108_v39  ;;  %v1110_v51 = vmax.f32 %v775_v40, 0.0  ;;  %v1112_v52 = vmax.f32 %v968_v41, 0.0 }
 0x12a   : > { %v1222_v53 = vadd.f32 %v1221_v26, %v1107_v44  ;;  %v1296_v54 = vadd.f32 %v1295_v27, %v1109_v45  ;;  %v1111_v56 = vmax.f32 %v777_v46, 0.0  ;;  %v1113_v57 = vmax.f32 %v970_v47, 0.0 }
 0x12b   : > { %v1186_v58 = vadd.f32 %v1185_v48, %v1110_v51  ;;  %v1260_v59 = vadd.f32 %v1259_v49, %v1112_v52 }
 0x12c   : > { %v1223_v0 = vadd.f32 %v1222_v53, %v1111_v56  ;;  %v1297_v1 = vadd.f32 %v1296_v54, %v1113_v57  ;;  %v780_v2 = vpop.f32.mrb[36].mxu0  ;;  %v973_v3 = vpop.f32.mrb[36].mxu1 }
 0x12d   : > { %v781_v4 = vadd.f32 %v780_v2, %v2509_v60  ;;  %v974_v5 = vadd.f32 %v973_v3, %v2511_v61  ;;  %v782_v6 = vpop.f32.mrb[37].mxu0  ;;  %v975_v7 = vpop.f32.mrb[37].mxu1 }
 0x12e   : > { %v783_v8 = vadd.f32 %v782_v6, %v2513_v62  ;;  %v976_v9 = vadd.f32 %v975_v7, %v2515_v63  ;;  %v784_v10 = vpop.f32.mrb[38].mxu0  ;;  %v977_v11 = vpop.f32.mrb[38].mxu1 }
 0x12f   : > { %v1114_v12 = vmax.f32 %v781_v4, 0.0  ;;  %v1116_v13 = vmax.f32 %v974_v5, 0.0  ;;  %v785_v14 = vadd.f32 %v784_v10, %v2509_v60  ;;  %v978_v15 = vadd.f32 %v977_v11, %v2511_v61  ;;  %v786_v17 = vpop.f32.mrb[39].mxu0  ;;  %v979_v18 = vpop.f32.mrb[39].mxu1 }
 0x130   : > { %v1115_v19 = vmax.f32 %v783_v8, 0.0  ;;  %v1117_v20 = vmax.f32 %v976_v9, 0.0  ;;  %v787_v21 = vadd.f32 %v786_v17, %v2513_v62  ;;  %v980_v22 = vadd.f32 %v979_v18, %v2515_v63 }
 0x131   : > { %v1187_v23 = vadd.f32 %v1186_v58, %v1114_v12  ;;  %v1261_v24 = vadd.f32 %v1260_v59, %v1116_v13  ;;  %v1118_v25 = vmax.f32 %v785_v14, 0.0  ;;  %v1120_v26 = vmax.f32 %v978_v15, 0.0 }
 0x132   : > { %v1224_v27 = vadd.f32 %v1223_v0, %v1115_v19  ;;  %v1298_v28 = vadd.f32 %v1297_v1, %v1117_v20  ;;  %v1119_v29 = vmax.f32 %v787_v21, 0.0  ;;  %v1121_v30 = vmax.f32 %v980_v22, 0.0 }
 0x133   : > { %v1188_v31 = vadd.f32 %v1187_v23, %v1118_v25  ;;  %v1262_v32 = vadd.f32 %v1261_v24, %v1120_v26 }
 0x134   : > { %v1225_v33 = vadd.f32 %v1224_v27, %v1119_v29  ;;  %v1299_v34 = vadd.f32 %v1298_v28, %v1121_v30  ;;  %v790_v35 = vpop.f32.mrb[40].mxu0  ;;  %v983_v36 = vpop.f32.mrb[40].mxu1 }
 0x135   : > { %v791_v37 = vadd.f32 %v790_v35, %v2509_v60  ;;  %v984_v38 = vadd.f32 %v983_v36, %v2511_v61  ;;  %v792_v39 = vpop.f32.mrb[41].mxu0  ;;  %v985_v40 = vpop.f32.mrb[41].mxu1 }
 0x136   : > { %v793_v41 = vadd.f32 %v792_v39, %v2513_v62  ;;  %v986_v42 = vadd.f32 %v985_v40, %v2515_v63  ;;  %v794_v43 = vpop.f32.mrb[42].mxu0  ;;  %v987_v44 = vpop.f32.mrb[42].mxu1 }
 0x137   : > { %v1122_v45 = vmax.f32 %v791_v37, 0.0  ;;  %v1124_v46 = vmax.f32 %v984_v38, 0.0  ;;  %v795_v47 = vadd.f32 %v794_v43, %v2509_v60  ;;  %v988_v48 = vadd.f32 %v987_v44, %v2511_v61  ;;  %v796_v49 = vpop.f32.mrb[43].mxu0  ;;  %v989_v51 = vpop.f32.mrb[43].mxu1 }
 0x138   : > { %v1123_v52 = vmax.f32 %v793_v41, 0.0  ;;  %v1125_v53 = vmax.f32 %v986_v42, 0.0  ;;  %v797_v54 = vadd.f32 %v796_v49, %v2513_v62  ;;  %v990_v56 = vadd.f32 %v989_v51, %v2515_v63 }
 0x139   : > { %v1189_v57 = vadd.f32 %v1188_v31, %v1122_v45  ;;  %v1263_v58 = vadd.f32 %v1262_v32, %v1124_v46  ;;  %v1126_v59 = vmax.f32 %v795_v47, 0.0  ;;  %v1128_v0 = vmax.f32 %v988_v48, 0.0 }
 0x13a   : > { %v1226_v1 = vadd.f32 %v1225_v33, %v1123_v52  ;;  %v1300_v2 = vadd.f32 %v1299_v34, %v1125_v53  ;;  %v1127_v3 = vmax.f32 %v797_v54, 0.0  ;;  %v1129_v4 = vmax.f32 %v990_v56, 0.0 }
 0x13b   : > { %v1190_v5 = vadd.f32 %v1189_v57, %v1126_v59  ;;  %v1264_v6 = vadd.f32 %v1263_v58, %v1128_v0 }
 0x13c   : > { %v1227_v7 = vadd.f32 %v1226_v1, %v1127_v3  ;;  %v1301_v8 = vadd.f32 %v1300_v2, %v1129_v4  ;;  %v800_v9 = vpop.f32.mrb[44].mxu0  ;;  %v993_v10 = vpop.f32.mrb[44].mxu1 }
 0x13d   : > { %v801_v11 = vadd.f32 %v800_v9, %v2509_v60  ;;  %v994_v12 = vadd.f32 %v993_v10, %v2511_v61  ;;  %v802_v13 = vpop.f32.mrb[45].mxu0  ;;  %v995_v14 = vpop.f32.mrb[45].mxu1 }
 0x13e   : > { %v803_v15 = vadd.f32 %v802_v13, %v2513_v62  ;;  %v996_v17 = vadd.f32 %v995_v14, %v2515_v63  ;;  %v804_v18 = vpop.f32.mrb[46].mxu0  ;;  %v997_v19 = vpop.f32.mrb[46].mxu1 }
 0x13f   : > { %v1130_v20 = vmax.f32 %v801_v11, 0.0  ;;  %v1132_v21 = vmax.f32 %v994_v12, 0.0  ;;  %v805_v22 = vadd.f32 %v804_v18, %v2509_v60  ;;  %v998_v23 = vadd.f32 %v997_v19, %v2511_v61  ;;  %v806_v24 = vpop.f32.mrb[47].mxu0  ;;  %v999_v25 = vpop.f32.mrb[47].mxu1 }
 0x140   : > { %v1131_v26 = vmax.f32 %v803_v15, 0.0  ;;  %v1133_v27 = vmax.f32 %v996_v17, 0.0  ;;  %v807_v28 = vadd.f32 %v806_v24, %v2513_v62  ;;  %v1000_v29 = vadd.f32 %v999_v25, %v2515_v63 }
 0x141   : > { %v1191_v30 = vadd.f32 %v1190_v5, %v1130_v20  ;;  %v1265_v31 = vadd.f32 %v1264_v6, %v1132_v21  ;;  %v1134_v32 = vmax.f32 %v805_v22, 0.0  ;;  %v1136_v33 = vmax.f32 %v998_v23, 0.0 }
 0x142   : > { %v1228_v34 = vadd.f32 %v1227_v7, %v1131_v26  ;;  %v1302_v35 = vadd.f32 %v1301_v8, %v1133_v27  ;;  %v1135_v36 = vmax.f32 %v807_v28, 0.0  ;;  %v1137_v37 = vmax.f32 %v1000_v29, 0.0 }
 0x143   : > { %v1192_v38 = vadd.f32 %v1191_v30, %v1134_v32  ;;  %v1266_v39 = vadd.f32 %v1265_v31, %v1136_v33 }
 0x144   : > { %v1229_v40 = vadd.f32 %v1228_v34, %v1135_v36  ;;  %v1303_v41 = vadd.f32 %v1302_v35, %v1137_v37  ;;  %v810_v42 = vpop.f32.mrb[48].mxu0  ;;  %v1003_v43 = vpop.f32.mrb[48].mxu1 }
 0x145   : > { %v811_v44 = vadd.f32 %v810_v42, %v2509_v60  ;;  %v1004_v45 = vadd.f32 %v1003_v43, %v2511_v61  ;;  %v812_v46 = vpop.f32.mrb[49].mxu0  ;;  %v1005_v47 = vpop.f32.mrb[49].mxu1 }
 0x146   : > { %v813_v48 = vadd.f32 %v812_v46, %v2513_v62  ;;  %v1006_v49 = vadd.f32 %v1005_v47, %v2515_v63  ;;  %v814_v51 = vpop.f32.mrb[50].mxu0  ;;  %v1007_v52 = vpop.f32.mrb[50].mxu1 }
 0x147   : > { %v1138_v53 = vmax.f32 %v811_v44, 0.0  ;;  %v1140_v54 = vmax.f32 %v1004_v45, 0.0  ;;  %v815_v56 = vadd.f32 %v814_v51, %v2509_v60  ;;  %v1008_v57 = vadd.f32 %v1007_v52, %v2511_v61  ;;  %v816_v58 = vpop.f32.mrb[51].mxu0  ;;  %v1009_v59 = vpop.f32.mrb[51].mxu1 }
 0x148   : > { %v1139_v0 = vmax.f32 %v813_v48, 0.0  ;;  %v1141_v1 = vmax.f32 %v1006_v49, 0.0  ;;  %v817_v2 = vadd.f32 %v816_v58, %v2513_v62  ;;  %v1010_v3 = vadd.f32 %v1009_v59, %v2515_v63 }
 0x149   : > { %v1193_v4 = vadd.f32 %v1192_v38, %v1138_v53  ;;  %v1267_v5 = vadd.f32 %v1266_v39, %v1140_v54  ;;  %v1142_v6 = vmax.f32 %v815_v56, 0.0  ;;  %v1144_v7 = vmax.f32 %v1008_v57, 0.0 }
 0x14a   : > { %v1230_v8 = vadd.f32 %v1229_v40, %v1139_v0  ;;  %v1304_v9 = vadd.f32 %v1303_v41, %v1141_v1  ;;  %v1143_v10 = vmax.f32 %v817_v2, 0.0  ;;  %v1145_v11 = vmax.f32 %v1010_v3, 0.0 }
 0x14b   : > { %v1194_v12 = vadd.f32 %v1193_v4, %v1142_v6  ;;  %v1268_v13 = vadd.f32 %v1267_v5, %v1144_v7 }
 0x14c   : > { %v1231_v14 = vadd.f32 %v1230_v8, %v1143_v10  ;;  %v1305_v15 = vadd.f32 %v1304_v9, %v1145_v11  ;;  %v820_v17 = vpop.f32.mrb[52].mxu0  ;;  %v1013_v18 = vpop.f32.mrb[52].mxu1 }
 0x14d   : > { %v821_v19 = vadd.f32 %v820_v17, %v2509_v60  ;;  %v1014_v20 = vadd.f32 %v1013_v18, %v2511_v61  ;;  %v822_v21 = vpop.f32.mrb[53].mxu0  ;;  %v1015_v22 = vpop.f32.mrb[53].mxu1 }
 0x14e   : > { %v823_v23 = vadd.f32 %v822_v21, %v2513_v62  ;;  %v1016_v24 = vadd.f32 %v1015_v22, %v2515_v63  ;;  %v824_v25 = vpop.f32.mrb[54].mxu0  ;;  %v1017_v26 = vpop.f32.mrb[54].mxu1 }
 0x14f   : > { %v1146_v27 = vmax.f32 %v821_v19, 0.0  ;;  %v1148_v28 = vmax.f32 %v1014_v20, 0.0  ;;  %v825_v29 = vadd.f32 %v824_v25, %v2509_v60  ;;  %v1018_v30 = vadd.f32 %v1017_v26, %v2511_v61  ;;  %v826_v31 = vpop.f32.mrb[55].mxu0  ;;  %v1019_v32 = vpop.f32.mrb[55].mxu1 }
 0x150   : > { %v1147_v33 = vmax.f32 %v823_v23, 0.0  ;;  %v1149_v34 = vmax.f32 %v1016_v24, 0.0  ;;  %v827_v35 = vadd.f32 %v826_v31, %v2513_v62  ;;  %v1020_v36 = vadd.f32 %v1019_v32, %v2515_v63 }
 0x151   : > { %v1195_v37 = vadd.f32 %v1194_v12, %v1146_v27  ;;  %v1269_v38 = vadd.f32 %v1268_v13, %v1148_v28  ;;  %v1150_v39 = vmax.f32 %v825_v29, 0.0  ;;  %v1152_v40 = vmax.f32 %v1018_v30, 0.0 }
 0x152   : > { %v1232_v41 = vadd.f32 %v1231_v14, %v1147_v33  ;;  %v1306_v42 = vadd.f32 %v1305_v15, %v1149_v34  ;;  %v1151_v43 = vmax.f32 %v827_v35, 0.0  ;;  %v1153_v44 = vmax.f32 %v1020_v36, 0.0 }
 0x153   : > { %v1196_v45 = vadd.f32 %v1195_v37, %v1150_v39  ;;  %v1270_v46 = vadd.f32 %v1269_v38, %v1152_v40 }
 0x154   : > { %v1233_v47 = vadd.f32 %v1232_v41, %v1151_v43  ;;  %v1307_v48 = vadd.f32 %v1306_v42, %v1153_v44  ;;  %v830_v49 = vpop.f32.mrb[56].mxu0  ;;  %v1023_v51 = vpop.f32.mrb[56].mxu1 }
 0x155   : > { %v831_v52 = vadd.f32 %v830_v49, %v2509_v60  ;;  %v1024_v53 = vadd.f32 %v1023_v51, %v2511_v61  ;;  %v832_v54 = vpop.f32.mrb[57].mxu0  ;;  %v1025_v56 = vpop.f32.mrb[57].mxu1 }
 0x156   : > { %v833_v57 = vadd.f32 %v832_v54, %v2513_v62  ;;  %v1026_v58 = vadd.f32 %v1025_v56, %v2515_v63  ;;  %v834_v59 = vpop.f32.mrb[58].mxu0  ;;  %v1027_v0 = vpop.f32.mrb[58].mxu1 }
 0x157   : > { %v1154_v1 = vmax.f32 %v831_v52, 0.0  ;;  %v1156_v2 = vmax.f32 %v1024_v53, 0.0  ;;  %v835_v3 = vadd.f32 %v834_v59, %v2509_v60  ;;  %v1028_v4 = vadd.f32 %v1027_v0, %v2511_v61  ;;  %v836_v5 = vpop.f32.mrb[59].mxu0  ;;  %v1029_v6 = vpop.f32.mrb[59].mxu1 }
 0x158   : > { %v1155_v7 = vmax.f32 %v833_v57, 0.0  ;;  %v1157_v8 = vmax.f32 %v1026_v58, 0.0  ;;  %v837_v9 = vadd.f32 %v836_v5, %v2513_v62  ;;  %v1030_v10 = vadd.f32 %v1029_v6, %v2515_v63 }
 0x159   : > { %v1197_v11 = vadd.f32 %v1196_v45, %v1154_v1  ;;  %v1271_v12 = vadd.f32 %v1270_v46, %v1156_v2  ;;  %v1158_v13 = vmax.f32 %v835_v3, 0.0  ;;  %v1160_v14 = vmax.f32 %v1028_v4, 0.0 }
 0x15a   : > { %v1234_v15 = vadd.f32 %v1233_v47, %v1155_v7  ;;  %v1308_v17 = vadd.f32 %v1307_v48, %v1157_v8  ;;  %v1159_v18 = vmax.f32 %v837_v9, 0.0  ;;  %v1161_v19 = vmax.f32 %v1030_v10, 0.0 }
 0x15b   : > { %v1198_v20 = vadd.f32 %v1197_v11, %v1158_v13  ;;  %v1272_v21 = vadd.f32 %v1271_v12, %v1160_v14 }
 0x15c   : > { %v1235_v22 = vadd.f32 %v1234_v15, %v1159_v18  ;;  %v1309_v23 = vadd.f32 %v1308_v17, %v1161_v19  ;;  %v840_v24 = vpop.f32.mrb[60].mxu0  ;;  %v1033_v25 = vpop.f32.mrb[60].mxu1 }
 0x15d   : > { %v841_v26 = vadd.f32 %v840_v24, %v2509_v60  ;;  %v1034_v27 = vadd.f32 %v1033_v25, %v2511_v61  ;;  %v842_v28 = vpop.f32.mrb[61].mxu0  ;;  %v1035_v29 = vpop.f32.mrb[61].mxu1  ;;  %v2204_v24 = vld [vmem:[%s2723_s8 + $0x8] sm:$0xff]   ;;  %v1660_v25 = vld [vmem:[%s420_s15] sm:$0x1] }
 0x15e   : > { %v843_v30 = vadd.f32 %v842_v28, %v2513_v62  ;;  %v1036_v31 = vadd.f32 %v1035_v29, %v2515_v63  ;;  %v844_v32 = vpop.f32.mrb[62].mxu0  ;;  %v1037_v33 = vpop.f32.mrb[62].mxu1  ;;  %v2206_v28 = vld [vmem:[%s2721_s6 + $0x8] sm:$0xff]  }
 0x15f   : > { %v1162_v34 = vmax.f32 %v841_v26, 0.0  ;;  %v1164_v35 = vmax.f32 %v1034_v27, 0.0  ;;  %v845_v36 = vadd.f32 %v844_v32, %v2509_v60  ;;  %v1038_v37 = vadd.f32 %v1037_v33, %v2511_v61  ;;  %v846_v38 = vpop.f32.mrb[63].mxu0  ;;  %v1039_v39 = vpop.f32.mrb[63].mxu1  ;;  %v2205_v27 = vld [vmem:[%s2721_s6] sm:$0xff]  }
 0x160   : > { %v1163_v40 = vmax.f32 %v843_v30, 0.0  ;;  %v1165_v41 = vmax.f32 %v1036_v31, 0.0  ;;  %v847_v42 = vadd.f32 %v846_v38, %v2513_v62  ;;  %v1040_v43 = vadd.f32 %v1039_v39, %v2515_v63  ;;  %v1386_v31 = vld [vmem:[%s2720_s5] sm:$0x1] }
 0x161   : > { %v1199_v44 = vadd.f32 %v1198_v20, %v1162_v34  ;;  %v1273_v45 = vadd.f32 %v1272_v21, %v1164_v35  ;;  %v1166_v46 = vmax.f32 %v845_v36, 0.0  ;;  %v1168_v47 = vmax.f32 %v1038_v37, 0.0  ;;  %v2203_v21 = vld [vmem:[%s2723_s8] sm:$0xff]  }
 0x162   : > { %v1236_v48 = vadd.f32 %v1235_v22, %v1163_v40  ;;  %v1310_v49 = vadd.f32 %v1309_v23, %v1165_v41  ;;  %v1167_v51 = vmax.f32 %v847_v42, 0.0  ;;  %v1169_v52 = vmax.f32 %v1040_v43, 0.0  ;;  %v1727_v42 = vld [vmem:[%s2724_s9] sm:$0x1] }
 0x163   : > { %v1200_v53 = vadd.f32 %v1199_v44, %v1166_v46  ;;  %v1274_v60 = vadd.f32 %v1273_v45, %v1168_v47  ;;  %v1722_v26 = vpack.c.bf16 %v1660_v25, %v1660_v25 }
 0x164   : > { %v1237_v54 = vadd.f32 %v1236_v48, %v1167_v51  ;;  %v1311_v61 = vadd.f32 %v1310_v49, %v1169_v52  ;;  %v1666_v51 = vld [vmem:[%s2722_s7] sm:$0x1] }
 0x165   : > { %v1201_v56 = vrot.slane %v1200_v53, 4  ;;  %v1275_v57 = vrot.slane %v1274_v60, 4 }
 0x166   : > { %v1238_v58 = vrot.slane %v1237_v54, 4  ;;  %v1312_v59 = vrot.slane %v1311_v61, 4 }
 0x167   : > { %v1202_v0 = vadd.f32 %v1201_v56, %v1200_v53  ;;  %v1276_v62 = vadd.f32 %v1275_v57, %v1274_v60 }
 0x168   : > { %v1239_v1 = vadd.f32 %v1238_v58, %v1237_v54  ;;  %v1313_v63 = vadd.f32 %v1312_v59, %v1311_v61 }
 0x169   : > { %v1203_v2 = vrot.slane %v1202_v0, 2  ;;  %v1277_v3 = vrot.slane %v1276_v62, 2 }
 0x16a   : > { %v1240_v4 = vrot.slane %v1239_v1, 2  ;;  %v1314_v5 = vrot.slane %v1313_v63, 2 }
 0x16b   : > { %v1204_v6 = vadd.f32 %v1203_v2, %v1202_v0  ;;  %v1278_v7 = vadd.f32 %v1277_v3, %v1276_v62  ;;  %v2207_v3 = vld [vmem:[%s2725_s10] sm:$0xff]  }
 0x16c   : > { %v1241_v8 = vadd.f32 %v1240_v4, %v1239_v1  ;;  %v1315_v9 = vadd.f32 %v1314_v5, %v1313_v63  ;;  %v2208_v5 = vld [vmem:[%s2725_s10 + $0x8] sm:$0xff]  }
 0x16d   : > { %v1205_v10 = vrot.slane %v1204_v6, 1  ;;  %v1279_v11 = vrot.slane %v1278_v7, 1 }
 0x16e   : > { %v1242_v12 = vrot.slane %v1241_v8, 1  ;;  %v1316_v13 = vrot.slane %v1315_v9, 1 }
 0x16f   : > { %v1206_v14 = vadd.f32 %v1205_v10, %v1204_v6  ;;  %v1280_v15 = vadd.f32 %v1279_v11, %v1278_v7  ;;  %v1811_v6 = vrot.slane %v1660_v25, %v469_v55 }
 0x170   : > { %v1243_v17 = vadd.f32 %v1242_v12, %v1241_v8  ;;  %v1317_v18 = vadd.f32 %v1316_v13, %v1315_v9 }
 0x171   : > { %v1318_v22 = vpack.c.bf16 %v1206_v14, %v1206_v14  ;;  %v1320_v23 = vpack.c.bf16 %v1280_v15, %v1280_v15 }
 0x172   : > { %v1319_v19 = vpack.c.bf16 %v1243_v17, %v1243_v17  ;;  %v1321_v20 = vpack.c.bf16 %v1317_v18, %v1317_v18 }
 0x174   : > { %1611 = vmatprep.mubr.bf16.mxu0 %v1319_v19  ;;  %1651 = vmatprep.mubr.bf16.mxu1 %v1321_v20 }
 0x175   : > { %1612 = vmatmul.mubr.bf16.vlgmr.msra.gmra.mrb[64].mxu0 %v1318_v22  ;;  %1652 = vmatmul.mubr.bf16.vlgmr.msra.gmra.mrb[64].mxu1 %v1320_v23 }
 0x176   : > { %2114 = vmatpush3.bf16.msra.mxu1 %v2203_v21  ;;  %2117 = vmatprep.mubr.msk.bf16.mxu1 %vm2225_vm1, %v2224_v16 }
 0x177   : > { %2115 = vmatprep.subr.bf16.mxu1 %v2224_v16  ;;  %2109 = vmatprep.mubr.msk.bf16.mxu0 %vm2225_vm1, %v2224_v16 }
 0x178   : > { %2106 = vmatpush3.bf16.msra.mxu0 %v2205_v27 }
 0x179   : > { %2107 = vmatprep.subr.bf16.mxu0 %v2224_v16 }
 0x17a   : > { %2116 = vmatpush3.bf16.msra.mxu1 %v2204_v24 }
 0x17c   : > { %2108 = vmatpush3.bf16.msra.mxu0 %v2206_v28 }
 0x17d   : > { %2118 = vmatmul.mubr.msk.bf16.vlgmr.msra.gmra.mrb[68].mxu1 %vm607_vm0, %v1722_v26  ;;  %2121 = vmatprep.subr.bf16.mxu0 %v2224_v16 }
 0x248   : > { %v2068_v29 = vpop.f32.mrb[64].mxu0  ;;  %v2090_v30 = vpop.f32.mrb[64].mxu1 }
 0x249   : > { %v2069_v32 = vpop.f32.mrb[65].mxu0  ;;  %v2091_v33 = vpop.f32.mrb[65].mxu1 }
 0x24a   : > { %v2070_v34 = vadd.f32 %v2069_v32, %v2068_v29  ;;  %v2092_v35 = vadd.f32 %v2091_v33, %v2090_v30  ;;  %v2071_v36 = vpop.f32.mrb[66].mxu0  ;;  %v2093_v37 = vpop.f32.mrb[66].mxu1 }
 0x24b   : > { %v2072_v38 = vpop.f32.mrb[67].mxu0  ;;  %v2094_v39 = vpop.f32.mrb[67].mxu1 }
 0x24c   : > { %v1614_v40 = vadd.f32 %v2070_v34, %v1386_v31 }
 0x24e   : > { %v1654_v41 = vadd.f32 %v2092_v35, %v1614_v40 }
 0x250   : > { %v1659_v43 = vmax.f32 %v1654_v41, 0.0  ;;  %v1777_v44 = vpop.f32.mrb[68].mxu1 }
 0x251   : > { %v1778_v45 = vadd.f32 %v1777_v44, %v1727_v42  ;;  %v2119_v46 = vpop.f32.mrb[69].mxu1 }
 0x252   : > { %v1661_v47 = vpack.c.bf16 %v1659_v43, %v1659_v43  ;;  %v1780_v48 = vpop.f32.mrb[70].mxu1 }
 0x253   : > { %v2120_v49 = vpop.f32.mrb[71].mxu1  ;;  %1791 = vrot.lane.b32.xlu0 %v1778_v45, %s2226_s28 }
 0x254   : > { %2110 = vmatmul.mubr.msk.bf16.vlgmr.msra.gmra.mrb[68].mxu0 %vm607_vm0, %v1661_v47 }
 0x255   : > { %2125 = vmatprep.mubr.msk.bf16.mxu0 %vm2225_vm1, %v2224_v16  ;;  %2122 = vmatpush3.bf16.msra.mxu0 %v2207_v3 }
 0x256   : > { %2123 = vmatprep.subr.bf16.mxu0 %v2224_v16 }
 0x259   : > { %2124 = vmatpush3.bf16.msra.mxu0 %v2208_v5 }
 0x2c5   : > { %v1792_v0 = vpop.permute.xlu0 %1791 }
 0x327   : > { %v1716_v52 = vpop.f32.mrb[68].mxu0 }
 0x328   : > { %v1717_v53 = vadd.f32 %v1716_v52, %v1666_v51  ;;  %v2111_v60 = vpop.f32.mrb[69].mxu0 }
 0x329   : > { %v1719_v54 = vpop.f32.mrb[70].mxu0 }
 0x32a   : > { %v1783_v61 = vadd.f32 %v1778_v45, %v1717_v53  ;;  %v2112_v56 = vpop.f32.mrb[71].mxu0 }
 0x32c   : > { %v2045_v57 = vmul.f32 -1.442695, %v1783_v61 }
 0x32e   : > { %2209 = vpow2.f32 %v2045_v57 }
 0x338   : > { %v2210_v58 = vpop.eup %2209 }
 0x339   : > { %v1787_v59 = vadd.f32 1.0, %v2210_v58 }
 0x33b   : > { %2211 = vrcp.f32 %v1787_v59 }
 0x345   : > { %v2212_v62 = vpop.eup %2211 }
 0x346   : > { %v1794_v1 = vmul.f32 %v2212_v62, %v1792_v0  ;;  %v1801_v8 = vsub.f32 1.0, %v2212_v62 }
 0x348   : > { %1796 = vrot.lane.b32.xlu0 %v1794_v1, %s2226_s28 }
 0x3ba   : > { %v1797_v63 = vpop.permute.xlu0 %1796 }
 0x3bb   : > { %v1799_v2 = vadd.f32 %v1797_v63, %v1717_v53 }
 0x3bd   : > { %2213 = vtanh.f32 %v1799_v2 }
 0x3c7   : > { %v2214_v4 = vpop.eup %2213 }
 0x3c8   : > { %1803 = vrot.lane.b32.xlu1 %v2214_v4, %s2227_s17 }
 0x3cc   : > { %1812 = vrot.lane.b32.xlu1 %v1811_v6, %s2228_s18 }
 0x43a   : > { %v1804_v7 = vpop.permute.xlu1 %1803 }
 0x43b   : > { %v1806_v10 = vmul.f32 %v1804_v7, %v1801_v8 }
 0x43e   : > { %v1813_v9 = vpop.permute.xlu1 %1812 }
 0x43f   : > { %v1815_v11 = vmul.f32 %v2212_v62, %v1813_v9 }
 0x441   : > { %v1816_v12 = vadd.f32 %v1815_v11, %v1806_v10 }
 0x443   : > { %1883 = vrot.lane.b32.xlu1 %v1816_v12, %s2228_s18  ;;  %v1817_v13 = vpack.c.bf16 %v1816_v12, %v1816_v12 }
 0x445   : > { %1824 = vrot.lane.b32.xlu0 %v1817_v13, %s2227_s17 }
 0x4b5   : > { %v1884_v18 = vpop.permute.xlu1 %1883 }
 0x4b7   : > { %v1825_v14 = vpop.permute.xlu0 %1824 }
 0x4b8   : > { %2126 = vmatmul.mubr.msk.bf16.vlgmr.msra.gmra.mrb[72].mxu0 %vm607_vm0, %v1825_v14 }
 0x58b   : > { %v1875_v55 = vpop.f32.mrb[72].mxu0 }
 0x58c   : > { %v1876_v16 = vadd.f32 %v1875_v55, %v1822_v50  ;;  %v2127_v15 = vpop.f32.mrb[73].mxu0 }
 0x58d   : > { %v1878_v17 = vpop.f32.mrb[74].mxu0 }
 0x58e   : > { %1881 = vst [vmem:[%s423_s25] sm:$0x1] %v1876_v16  ;;  %v2128_v19 = vpop.f32.mrb[75].mxu0 }
 0x58f   : > { %1887 = vst.msk [vmem:[%s423_s25] sm:$0x1] %vm1886_vm2, %v1884_v18 }
 0x590 PF: > { %s22_s21 = sadd.s32 1, %s2221_s21  }
 0x591   : > { %p19_p4 = scmp.ge.s32.totalorder %s22_s21, 4  }
 0x593   :  { %21 = sbr.rel (!%p19_p4) target bundleno = 1 (0x1), region = 101 }

</bundles_post_ra>
